<compile_context>
chip_gen: v7x
topology: tpu7x:2x2x1
jax: 0.10.0
libtpu: 0.0.40
codegen_flags: <defaults>
</compile_context>

<pallas_src>
import functools

import jax
import jax.numpy as jnp
from jax.experimental import pallas as pl
from jax.experimental.pallas import tpu as pltpu


def _round_up(x, m):
    return ((x + m - 1) // m) * m


def _device_tuning():
    """Generation-aware (row_tile, vmem_limit_bytes).

    v5e: 128-wide MXU -> ts=128 (and only 16 MiB default scoped VMEM, so the
    explicit limit matters early).  v6e/v7x: 256-wide MXU -> ts=256.
    vmem_limit ~ 75% of physical VMEM, capped at 100 MiB (=> ~96 MiB on the
    128 MiB v5e/v6e parts, ~48 MiB on the 64 MiB v7x).
    """
    kind = ""
    try:
        kind = jax.devices()[0].device_kind.lower()
    except Exception:
        pass
    is_v5e = ("v5e" in kind) or ("v5 lite" in kind) or ("v5lite" in kind)
    row_tile = 128 if is_v5e else 256

    vmem_cap = 64 * 1024 * 1024  # conservative fallback (v7x-sized)
    try:
        vmem_cap = int(pltpu.get_tpu_info().vmem_capacity_bytes)
    except Exception:
        pass
    vmem_limit = max(32 * 1024 * 1024,
                     min((vmem_cap * 3) // 4, 100 * 1024 * 1024))
    return row_tile, vmem_limit


def _softmax_fc_leaky(scores, w_fc_ref, b_fc_ref, out_ref, p_actual):
    """scores: (ts, Pp) f32 -> masked softmax -> fc -> LeakyReLU -> out_ref."""
    p_pad = scores.shape[-1]
    if p_pad != p_actual:  # static branch: mask padded parg columns
        col = jax.lax.broadcasted_iota(jnp.int32, scores.shape, 1)
        scores = jnp.where(col < p_actual, scores, -1e30)

    # Row-wise softmax (F.softmax default dim for 2-D input), all in f32.
    scores = scores - jnp.max(scores, axis=-1, keepdims=True)
    e = jnp.exp(scores)
    denom = jnp.sum(e, axis=-1, keepdims=True)
    attn = e * pl.reciprocal(denom, approx=False)   # exact EUP reciprocal

    # fc (Linear): attn @ W_fc^T + b_fc  (bf16 MXU operands, f32 accumulate)
    out = jnp.dot(attn.astype(w_fc_ref.dtype), w_fc_ref[...],
                  preferred_element_type=jnp.float32) + b_fc_ref[...]

    # LeakyReLU, negative_slope = 0.01 (PyTorch default)
    out_ref[...] = jnp.where(out > 0, out, 0.01 * out).astype(out_ref.dtype)


def _fused_kernel(p_actual, sent_ref, w_comb_ref, b_comb_ref, w_fc_ref,
                  b_fc_ref, out_ref):
    # scores = (x @ W_att^T + b_att) @ parg^T  ==  x @ W_comb + b_comb
    scores = jnp.dot(sent_ref[...], w_comb_ref[...],
                     preferred_element_type=jnp.float32) + b_comb_ref[...]
    _softmax_fc_leaky(scores, w_fc_ref, b_fc_ref, out_ref, p_actual)


def _unfused_kernel(p_actual, sent_ref, w_att_ref, b_att_ref, parg_t_ref,
                    w_fc_ref, b_fc_ref, out_ref):
    sent_proj = jnp.dot(sent_ref[...], w_att_ref[...],
                        preferred_element_type=jnp.float32) + b_att_ref[...]
    scores = jnp.dot(sent_proj.astype(parg_t_ref.dtype), parg_t_ref[...],
                     preferred_element_type=jnp.float32)
    _softmax_fc_leaky(scores, w_fc_ref, b_fc_ref, out_ref, p_actual)


def lineart_forward(sent_enc, parg_enc, w_att, b_att, w_fc, b_fc, *,
                    fuse_att=None, ts=None, mxu_dtype=jnp.bfloat16):
    """sent_enc: [S, D], parg_enc: [P, D]; w_att: [D, D] (torch [out,in]),
    b_att: [D]; w_fc: [D, P] (torch [out,in]), b_fc: [D]."""
    S, D = sent_enc.shape
    P, D2 = parg_enc.shape
    assert D2 == D
    out_dtype = sent_enc.dtype

    row_tile, vmem_limit = _device_tuning()
    if ts is None:
        ts = row_tile
    if fuse_att is None:
        # Fusing att_proj into the scores matmul replaces an SxDxD contraction
        # with a one-time DxDxP precompute: only a win when S >= P (or when
        # parg_enc/weights are static and the precompute is cached by caller).
        fuse_att = S >= P

    # Lane-dense padding (last dims to multiples of 128) + row-tile S padding.
    Dp = _round_up(D, 128)
    Pp = _round_up(P, 128)
    Sp = _round_up(S, ts)

    x = jnp.pad(sent_enc, ((0, Sp - S), (0, Dp - D))).astype(mxu_dtype)
    parg = jnp.pad(parg_enc, ((0, Pp - P), (0, Dp - D))).astype(jnp.float32)
    w_att_p = jnp.pad(w_att, ((0, Dp - D), (0, Dp - D))).astype(jnp.float32)
    b_att_p = jnp.pad(b_att, (0, Dp - D)).astype(jnp.float32)
    w_fc_p = jnp.pad(w_fc, ((0, Dp - D), (0, Pp - P))).astype(jnp.float32)
    b_fc_p = jnp.pad(b_fc, (0, Dp - D)).astype(jnp.float32)

    b_fc_2d = b_fc_p.reshape(1, Dp)                  # f32
    w_fc_t = w_fc_p.T.astype(mxu_dtype)              # (Pp, Dp)

    num_tiles = Sp // ts
    inv = pl.Buffered(1)   # loop-invariant operands: single VMEM buffer

    if fuse_att:
        # One-time algebraic fusion of att_proj into the scores matmul.
        # TODO(synk): for repeated calls with the same weights/parg_enc this
        #             precompute should be hoisted/cached outside the forward.
        w_comb = jnp.dot(w_att_p.T, parg.T,
                         preferred_element_type=jnp.float32).astype(mxu_dtype)
        b_comb = jnp.dot(b_att_p.reshape(1, Dp), parg.T,
                         preferred_element_type=jnp.float32)    # (1, Pp) f32
        kernel = functools.partial(_fused_kernel, P)
        in_specs = [
            pl.BlockSpec((ts, Dp), lambda i: (i, 0)),                    # x tile
            pl.BlockSpec((Dp, Pp), lambda i: (0, 0), pipeline_mode=inv),  # w_comb
            pl.BlockSpec((1, Pp), lambda i: (0, 0), pipeline_mode=inv),   # b_comb
            pl.BlockSpec((Pp, Dp), lambda i: (0, 0), pipeline_mode=inv),  # w_fc_t
            pl.BlockSpec((1, Dp), lambda i: (0, 0), pipeline_mode=inv),   # b_fc
        ]
        args = (x, w_comb, b_comb, w_fc_t, b_fc_2d)
    else:
        w_att_t = w_att_p.T.astype(mxu_dtype)        # (Dp, Dp), in-dim major
        b_att_2d = b_att_p.reshape(1, Dp)            # f32
        parg_t = parg.T.astype(mxu_dtype)            # (Dp, Pp)
        kernel = functools.partial(_unfused_kernel, P)
        in_specs = [
            pl.BlockSpec((ts, Dp), lambda i: (i, 0)),                     # x tile
            pl.BlockSpec((Dp, Dp), lambda i: (0, 0), pipeline_mode=inv),  # w_att_t
            pl.BlockSpec((1, Dp), lambda i: (0, 0), pipeline_mode=inv),   # b_att
            pl.BlockSpec((Dp, Pp), lambda i: (0, 0), pipeline_mode=inv),  # parg^T
            pl.BlockSpec((Pp, Dp), lambda i: (0, 0), pipeline_mode=inv),  # w_fc_t
            pl.BlockSpec((1, Dp), lambda i: (0, 0), pipeline_mode=inv),   # b_fc
        ]
        args = (x, w_att_t, b_att_2d, parg_t, w_fc_t, b_fc_2d)

    out = pl.pallas_call(
        kernel,
        out_shape=jax.ShapeDtypeStruct((Sp, Dp), out_dtype),
        grid_spec=pltpu.PrefetchScalarGridSpec(
            num_scalar_prefetch=0,
            grid=(num_tiles,),
            in_specs=in_specs,
            out_specs=pl.BlockSpec((ts, Dp), lambda i: (i, 0)),
        ),
        compiler_params=pltpu.CompilerParams(
            dimension_semantics=("parallel",),
            vmem_limit_bytes=int(vmem_limit)),
    )(*args)

    return out[:S, :D]


def lineart_reference(sent_enc, parg_enc, w_att, b_att, w_fc, b_fc):
    # Unfused f32 reference matching the PyTorch forward (eval mode).
    sent_proj = sent_enc @ w_att.T + b_att
    attn = jax.nn.softmax(sent_proj @ parg_enc.T, axis=-1)
    out = attn @ w_fc.T + b_fc
    return jnp.where(out > 0, out, 0.01 * out)


if __name__ == "__main__":
    # Small demo shapes: S not a multiple of the row tile (exercises S
    # padding) and P not a multiple of 128 (exercises the softmax mask).
    S, D, P = 384, 128, 192   # seq len, word_dim, num_parg

    key = jax.random.PRNGKey(0)
    k1, k2, k3, k4, k5, k6 = jax.random.split(key, 6)

    sent_enc = jax.random.normal(k1, (S, D), dtype=jnp.float32)
    parg_enc = jax.random.normal(k2, (P, D), dtype=jnp.float32)

    # Deterministic parameter init (shapes follow nn.Linear: weight [out,in]).
    lim_att = 1.0 / (D ** 0.5)
    lim_fc = 1.0 / (P ** 0.5)
    w_att = jax.random.uniform(k3, (D, D), jnp.float32, -lim_att, lim_att)
    b_att = jax.random.uniform(k4, (D,), jnp.float32, -lim_att, lim_att)
    w_fc = jax.random.uniform(k5, (D, P), jnp.float32, -lim_fc, lim_fc)
    b_fc = jax.random.uniform(k6, (D,), jnp.float32, -lim_fc, lim_fc)

    ref = lineart_reference(sent_enc, parg_enc, w_att, b_att, w_fc, b_fc)

    out_fused = lineart_forward(sent_enc, parg_enc, w_att, b_att, w_fc, b_fc,
                                fuse_att=True)
    out_unfused = lineart_forward(sent_enc, parg_enc, w_att, b_att, w_fc,
                                  b_fc, fuse_att=False)
    out_fused, out_unfused = jax.block_until_ready((out_fused, out_unfused))

    assert out_fused.shape == (S, D)
    assert out_unfused.shape == (S, D)
    # bf16 MXU operands (f32 accumulation) -> tolerances loosened accordingly.
    assert jnp.allclose(out_fused, ref, atol=3e-2, rtol=3e-2), \
        "fused kernel mismatch vs reference"
    assert jnp.allclose(out_unfused, ref, atol=3e-2, rtol=3e-2), \
        "unfused kernel mismatch vs reference"

    print("KERNEL_OK")
</pallas_src>

<mosaic_0001>
module attributes {stable_mosaic.version = 11 : i64} {
  func.func @_fused_kernel(%arg0: i32, %arg1: memref<256x128xbf16, #tpu.memory_space<vmem>>, %arg2: memref<128x256xbf16, #tpu.memory_space<vmem>>, %arg3: memref<1x256xf32, #tpu.memory_space<vmem>>, %arg4: memref<256x128xbf16, #tpu.memory_space<vmem>>, %arg5: memref<1x128xf32, #tpu.memory_space<vmem>>, %arg6: memref<256x128xf32, #tpu.memory_space<vmem>>) attributes {dimension_semantics = [#tpu.dimension_semantics<parallel>], iteration_bounds = array<i64: 2>, scalar_prefetch = 0 : i64, scratch_operands = 0 : i64, tpu.core_type = #tpu.core_type<tc>, window_params = [{transform_indices = @transform_0, window_bounds = array<i64: 256, 128>}, {pipeline_mode = #tpu.pipeline_mode<synchronous>, transform_indices = @transform_1, window_bounds = array<i64: 128, 256>}, {pipeline_mode = #tpu.pipeline_mode<synchronous>, transform_indices = @transform_2, window_bounds = array<i64: 1, 256>}, {pipeline_mode = #tpu.pipeline_mode<synchronous>, transform_indices = @transform_3, window_bounds = array<i64: 256, 128>}, {pipeline_mode = #tpu.pipeline_mode<synchronous>, transform_indices = @transform_4, window_bounds = array<i64: 1, 128>}, {transform_indices = @transform_5, window_bounds = array<i64: 256, 128>}]} {
    %c0 = arith.constant 0 : index
    %c0_0 = arith.constant 0 : index
    %0 = vector.load %arg1[%c0, %c0_0] : memref<256x128xbf16, #tpu.memory_space<vmem>>, vector<256x128xbf16>
    %c0_1 = arith.constant 0 : index
    %c0_2 = arith.constant 0 : index
    %1 = vector.load %arg2[%c0_1, %c0_2] : memref<128x256xbf16, #tpu.memory_space<vmem>>, vector<128x256xbf16>
    %cst = arith.constant dense<0.000000e+00> : vector<256x256xf32>
    %2 = tpu.matmul %0, %1, %cst {dimension_numbers = #tpu.dot_dimension_numbers<[1], [0], [0], [1], [0, 0, 1, 1], [], []>} : vector<256x128xbf16>, vector<128x256xbf16>, vector<256x256xf32> -> vector<256x256xf32>
    %c0_3 = arith.constant 0 : index
    %c0_4 = arith.constant 0 : index
    %3 = vector.load %arg3[%c0_3, %c0_4] : memref<1x256xf32, #tpu.memory_space<vmem>>, vector<1x256xf32>
    %4 = vector.broadcast %3 : vector<1x256xf32> to vector<256x256xf32>
    %5 = arith.addf %2, %4 : vector<256x256xf32>
    %6 = tpu.iota {dimensions = array<i32: 1>} : vector<256x256xi32>
    %c192_i32 = arith.constant 192 : i32
    %7 = vector.broadcast %c192_i32 : i32 to vector<256x256xi32>
    %8 = arith.cmpi slt, %6, %7 : vector<256x256xi32>
    %cst_5 = arith.constant -1.000000e+30 : f32
    %9 = vector.broadcast %cst_5 : f32 to vector<256x256xf32>
    %10 = arith.select %8, %5, %9 : vector<256x256xi1>, vector<256x256xf32>
    %cst_6 = arith.constant dense<0xFF800000> : vector<256xf32>
    %11 = vector.multi_reduction <maximumf>, %10, %cst_6 [1] : vector<256x256xf32> to vector<256xf32>
    %12 = vector.shape_cast %11 : vector<256xf32> to vector<256x1xf32>
    %13 = vector.broadcast %12 : vector<256x1xf32> to vector<256x256xf32>
    %14 = arith.subf %10, %13 : vector<256x256xf32>
    %15 = math.exp %14 : vector<256x256xf32>
    %cst_7 = arith.constant dense<0.000000e+00> : vector<256xf32>
    %16 = vector.multi_reduction <add>, %15, %cst_7 [1] : vector<256x256xf32> to vector<256xf32>
    %17 = vector.shape_cast %16 : vector<256xf32> to vector<256x1xf32>
    %18 = tpu.reciprocal %17 : vector<256x1xf32> -> vector<256x1xf32>
    %19 = vector.broadcast %18 : vector<256x1xf32> to vector<256x256xf32>
    %20 = arith.mulf %15, %19 : vector<256x256xf32>
    %21 = arith.truncf %20 : vector<256x256xf32> to vector<256x256xbf16>
    %c0_8 = arith.constant 0 : index
    %c0_9 = arith.constant 0 : index
    %22 = vector.load %arg4[%c0_8, %c0_9] : memref<256x128xbf16, #tpu.memory_space<vmem>>, vector<256x128xbf16>
    %cst_10 = arith.constant dense<0.000000e+00> : vector<256x128xf32>
    %23 = tpu.matmul %21, %22, %cst_10 {dimension_numbers = #tpu.dot_dimension_numbers<[1], [0], [0], [1], [0, 0, 1, 1], [], []>} : vector<256x256xbf16>, vector<256x128xbf16>, vector<256x128xf32> -> vector<256x128xf32>
    %c0_11 = arith.constant 0 : index
    %c0_12 = arith.constant 0 : index
    %24 = vector.load %arg5[%c0_11, %c0_12] : memref<1x128xf32, #tpu.memory_space<vmem>>, vector<1x128xf32>
    %25 = vector.broadcast %24 : vector<1x128xf32> to vector<256x128xf32>
    %26 = arith.addf %23, %25 : vector<256x128xf32>
    %cst_13 = arith.constant 0.000000e+00 : f32
    %27 = vector.broadcast %cst_13 : f32 to vector<256x128xf32>
    %28 = arith.cmpf ogt, %26, %27 : vector<256x128xf32>
    %cst_14 = arith.constant 0.00999999977 : f32
    %29 = vector.broadcast %cst_14 : f32 to vector<256x128xf32>
    %30 = arith.mulf %29, %26 : vector<256x128xf32>
    %31 = arith.select %28, %26, %30 : vector<256x128xi1>, vector<256x128xf32>
    %c0_15 = arith.constant 0 : index
    %c0_16 = arith.constant 0 : index
    %32 = vector.load %arg6[%c0_15, %c0_16] : memref<256x128xf32, #tpu.memory_space<vmem>>, vector<256x128xf32>
    tpu.vector_store %arg6[%c0_15, %c0_16], %31 {strides = array<i32>} : memref<256x128xf32, #tpu.memory_space<vmem>>, vector<256x128xf32>,
    return
  }
  func.func @transform_0(%arg0: i32) -> (i32, i32) {
    %c0_i32 = arith.constant 0 : i32
    %c0_i32_0 = arith.constant 0 : i32
    return %arg0, %c0_i32 : i32, i32
  }
  func.func @transform_1(%arg0: i32) -> (i32, i32) {
    %c0_i32 = arith.constant 0 : i32
    %c0_i32_0 = arith.constant 0 : i32
    %c0_i32_1 = arith.constant 0 : i32
    return %c0_i32, %c0_i32_0 : i32, i32
  }
  func.func @transform_2(%arg0: i32) -> (i32, i32) {
    %c0_i32 = arith.constant 0 : i32
    %c0_i32_0 = arith.constant 0 : i32
    %c0_i32_1 = arith.constant 0 : i32
    return %c0_i32, %c0_i32_0 : i32, i32
  }
  func.func @transform_3(%arg0: i32) -> (i32, i32) {
    %c0_i32 = arith.constant 0 : i32
    %c0_i32_0 = arith.constant 0 : i32
    %c0_i32_1 = arith.constant 0 : i32
    return %c0_i32, %c0_i32_0 : i32, i32
  }
  func.func @transform_4(%arg0: i32) -> (i32, i32) {
    %c0_i32 = arith.constant 0 : i32
    %c0_i32_0 = arith.constant 0 : i32
    %c0_i32_1 = arith.constant 0 : i32
    return %c0_i32, %c0_i32_0 : i32, i32
  }
  func.func @transform_5(%arg0: i32) -> (i32, i32) {
    %c0_i32 = arith.constant 0 : i32
    %c0_i32_0 = arith.constant 0 : i32
    return %arg0, %c0_i32 : i32, i32
  }
}

</mosaic_0001>

<bundles_post_ra>
// kernel: tpu_custom_call.1
= control target key start
LH: loop header
LB: loop body
LE: loop exit
PB: predicated region body
PF: predicated region fallthrough
CT: control target
= control target key end

     0   :  { %10 = vsyncpa [#allocation3], 0  ;;  %s3550_s0 = inlined_call_operand.hbm [shape: bf16[512,128], index: 0, kind: input, shape index: {}]   ;;  %s3551_s1 = inlined_call_operand.hbm [shape: bf16[128,256], index: 1, kind: input, shape index: {}]   ;;  %s3552_s2 = inlined_call_operand.vmem [shape: f32[1,256], index: 2, kind: input, shape index: {}]   ;;  %s3553_s3 = inlined_call_operand.hbm [shape: bf16[256,128], index: 3, kind: input, shape index: {}]   ;;  %s3554_s4 = inlined_call_operand.vmem [shape: f32[1,128], index: 4, kind: input, shape index: {}]   ;;  %s3555_s5 = inlined_call_operand.hbm [shape: f32[512,128], index: 5, kind: output, shape index: {}]  }
   0x1   :  { %12 = vsyncpa [#allocation3 + $0x1], 0 }
   0x2   :  { %13 = vsyncpa [#allocation6], 0 }
   0x3   :  { %14 = vsyncpa [#allocation4], 0 }
   0x4   :  { %16 = vsyncpa [#allocation4 + $0x1], 0  ;;  %s2517_s18 = smov 0   ;;  %s2519_s19 = smov 0  }
   0x5   :  { %s2521_s20 = smov 0   ;;  %s2523_s21 = smov 0  }
   0x6 LB: > { %s2538_s22 = sadd.s32 4294967295, %s2474_s21   ;;  %s1815_s23 = sadd.s32 4294967294, %s2474_s21   ;;  %s2474_s21 = sphi %s2523_s21, %s3665_s21   ;;  %s2470_s20 = sphi %s2521_s20, %s3664_s20   ;;  %s2466_s19 = sphi %s2519_s19, %s3663_s19   ;;  %s2462_s18 = sphi %s2517_s18, %s3662_s18  }
   0x7   : > { %p42_p0 = scmp.ne.s32.totalorder %s2466_s19, %s2462_s18  ;;  %p3556_p1 = scmp.eq.s32.totalorder %s2538_s22, 0 }
   0x8   : > { %p156_p3 = scmp.eq.s32.totalorder %s1815_s23, 1  ;;  %p1816_p5 = scmp.ge.s32.totalorder %s2474_s21, 1 }
   0x9   : > { %p2547_p4 = por %p3556_p1, %p42_p0  ;;  %p163_p7 = scmp.lt.s32.totalorder %s2474_s21, 3 }
   0xa   : > { %p2552_p6 = por %p156_p3, %p42_p0  ;;  %s2476_s27 = smov [#allocation5]  }
   0xb   : > { %s3589_s24 = scalar_select %p2547_p4, 1, 0 }
   0xc   : > { %s3590_s25 = scalar_select %p2552_p6, 1, 0 }
   0xd   : > { %p2557_p8 = pnand %p1816_p5, %p163_p7  ;;  %s175_s28 = sshll.u32 %s2476_s27, 4  ;;  %s2561_s28 = int_to_ptr.vmem [resolvable:$true] %s175_s28 }
   0xe   : > { %s2477_s30 = smov [#allocation7]   ;;  %s2318_s9 = scalar_lea.hbm %s3551_s1, 2048 }
   0xf   : > { %p2008_p9 = pneg %p2557_p8  ;;  %s191_s6 = sshll.u32 %s2477_s30, 4  ;;  %s2572_s6 = int_to_ptr.vmem [resolvable:$true] %s191_s6 }
  0x10   : > { %p2319_p12 = scmp.ne.s32.totalorder %s3551_s1, %s2318_s9  ;;  %p2325_p5 = scmp.lt.u32.totalorder %s2318_s9, %s3551_s1 }
  0x11   : > { %p2568_p11 = pnand %p2008_p9, %p3556_p1 }
  0x13   : > { %p2320_p13 = pneg %p2568_p11 }
  0x15   : > { %p2321_p0 = pnand %p2320_p13, %p2319_p12 }
  0x17   : > { %p2322_p3 = pneg %p2321_p0 }
  0x19   : > { %p2327_p7 = pnand %p2325_p5, %p2322_p3 }
  0x1b   : > { %2330 = shalt.err (!%p2327_p7)
}
  0x1c   : > { %s2331_s14 = scalar_lea.vmem %s2561_s28, 2048  ;;  %p2339_p2 = scmp.lt.s32.totalorder %s2561_s28, %s2561_s28 }
  0x1d   : > { %p2332_p9 = scmp.ne.s32.totalorder %s2561_s28, %s2331_s14  ;;  %p2340_p12 = scmp.lt.s32.totalorder %s2331_s14, %s2331_s14 }
  0x1f   : > { %p2334_p10 = pnand %p2332_p9, %p2320_p13  ;;  %p2341_p0 = por %p2340_p12, %p2339_p2 }
  0x21   : > { %p2335_p1 = pneg %p2334_p10 }
  0x23   : > { %p2342_p6 = pnand %p2341_p0, %p2335_p1 }
  0x25   : > { %2345 = shalt.err (!%p2342_p6)
}
  0x26   : > { %s2478_s15 = smov 128   ;;  %s2479_s16 = smov 8  }
  0x27   : > { %2011 = dma.hbm_to_vmem [thread:$0]  (!%p2568_p11), %s3551_s1, 2048, %s2561_s28, [#allocation6], %s2478_s15, %s2478_s15, %s2479_s16  }
  0x28   : > { %s2346_s7 = scalar_lea.hbm %s3553_s3, 2048 }
  0x29   : > { %p2347_p2 = scmp.ne.s32.totalorder %s3553_s3, %s2346_s7  ;;  %p2353_p10 = scmp.lt.u32.totalorder %s2346_s7, %s3553_s3 }
  0x2b   : > { %p2349_p1 = pnand %p2347_p2, %p2320_p13 }
  0x2d   : > { %p2350_p6 = pneg %p2349_p1 }
  0x2f   : > { %p2355_p3 = pnand %p2353_p10, %p2350_p6 }
  0x31   : > { %2358 = shalt.err (!%p2355_p3)
}
  0x32   : > { %s2359_s28 = scalar_lea.vmem %s2572_s6, 2048  ;;  %p2367_p12 = scmp.lt.s32.totalorder %s2572_s6, %s2572_s6 }
  0x33   : > { %p2360_p5 = scmp.ne.s32.totalorder %s2572_s6, %s2359_s28  ;;  %p2368_p0 = scmp.lt.s32.totalorder %s2359_s28, %s2359_s28 }
  0x35   : > { %p2362_p7 = pnand %p2360_p5, %p2320_p13  ;;  %p2369_p2 = por %p2368_p0, %p2367_p12 }
  0x37   : > { %p2363_p9 = pneg %p2362_p7 }
  0x39   : > { %p2370_p1 = pnand %p2369_p2, %p2363_p9 }
  0x3b   : > { %2373 = shalt.err (!%p2370_p1)
}
  0x3c   : > { %s2480_s12 = smov 64   ;;  %s2481_s13 = smov 4  }
  0x3d   : > { %2014 = dma.hbm_to_vmem [thread:$0]  (!%p2568_p11), %s3553_s3, 2048, %s2572_s6, [#allocation6], %s2480_s12, %s2480_s12, %s2481_s13  }
  0x3e   : > { %s2630_s16 = sadd.s32 1, %s2474_s21   ;;  %s29_s23 = sadd.s32 1, %s2470_s20 }
  0x3f   : > { %s26_s17 = ssub.s32 %s2474_s21, %s2630_s16  ;;  %p36_p6 = scmp.ne.s32.totalorder %s2470_s20, %s2466_s19 }
  0x40   : > { %p27_p13 = scmp.eq.s32.totalorder %s26_s17, 0  ;;  %p37_p10 = scmp.eq.s32.totalorder %s2474_s21, 0 }
  0x41   : > { %p3593_p5 = scmp.eq.s32.totalorder %s2538_s22, 1  ;;  %p2025_p9 = scmp.lt.s32.totalorder %s2474_s21, 2 }
  0x42   : > { %s2639_s27 = scalar_select %p27_p13, %s2470_s20, %s29_s23  }
  0x43   : > { %p38_p3 = por %p37_p10, %p36_p6  ;;  %p2643_p7 = por %p3593_p5, %p36_p6 }
  0x44   : > { %s208_s30 = sand.u32 1, %s2470_s20   ;;  %s1882_s6 = sshll.u32 %s2474_s21, 11 }
  0x45   : > { %s3594_s29 = scalar_select %p2643_p7, 1, 0 }
  0x46   : > { %s1820_s7 = sshll.u32 %s208_s30, 7  ;;  %s2653_s10 = scalar_lea.hbm %s3550_s0, %s1882_s6 }
  0x47   : > { %s212_s11 = scalar_lea.vmem [#allocation2], %s1820_s7  ;;  %p2657_p11 = pnand %p2025_p9, %p38_p3 }
  0x48   : > { %s219_s28 = sshll.u32 %s212_s11, 4  ;;  %s2661_s15 = scalar_lea.sflag [#allocation3], %s208_s30  ;;  %s2655_s28 = int_to_ptr.vmem [resolvable:$true] %s219_s28 }
  0x49   : > { %s2374_s17 = scalar_lea.hbm %s2653_s10, 2048  ;;  %p2376_p0 = pneg %p2657_p11 }
  0x4a   : > { %p2375_p12 = scmp.ne.s32.totalorder %s2653_s10, %s2374_s17  ;;  %s2379_s6 = scalar_lea.hbm %s3550_s0, 4096 }
  0x4b   : > { %p2380_p13 = scmp.lt.u32.totalorder %s2653_s10, %s3550_s0  ;;  %p2381_p6 = scmp.lt.u32.totalorder %s2379_s6, %s2374_s17 }
  0x4c   : > { %p2377_p2 = pnand %p2376_p0, %p2375_p12  ;;  %p2383_p3 = scmp.lt.u32.totalorder %s2374_s17, %s2653_s10 }
  0x4d   : > { %p2382_p10 = por %p2381_p6, %p2380_p13 }
  0x4e   : > { %p2378_p1 = pneg %p2377_p2 }
  0x4f   : > { %p2384_p5 = por %p2383_p3, %p2382_p10 }
  0x51   : > { %p2385_p9 = pnand %p2384_p5, %p2378_p1 }
  0x53   : > { %2388 = shalt.err (!%p2385_p9)
}
  0x54   : > { %s2389_s30 = scalar_lea.vmem %s2655_s28, 2048  ;;  %s2482_s11 = smov [#allocation2]  }
  0x55   : > { %p2390_p12 = scmp.ne.s32.totalorder %s2655_s28, %s2389_s30  ;;  %s2394_s23 = sshll.u32 %s2482_s11, 4  ;;  %s2395_s23 = int_to_ptr.vmem [resolvable:$false] %s2394_s23 }
  0x56   : > { %s2396_s7 = scalar_lea.vmem %s2395_s23, 4096  ;;  %p2397_p4 = scmp.lt.s32.totalorder %s2655_s28, %s2395_s23 }
  0x57   : > { %p2392_p2 = pnand %p2390_p12, %p2376_p0  ;;  %p2398_p13 = scmp.lt.s32.totalorder %s2396_s7, %s2389_s30 }
  0x59   : > { %p2393_p7 = pneg %p2392_p2  ;;  %p2399_p6 = por %p2398_p13, %p2397_p4 }
  0x5b   : > { %p2400_p10 = pnand %p2399_p6, %p2393_p7 }
  0x5d   : > { %2403 = shalt.err (!%p2400_p10)
}
  0x5e   : > { %2018 = dma.hbm_to_vmem [thread:$0]  (!%p2657_p11), %s2653_s10, 2048, %s2655_s28, %s2661_s15, %s2480_s12, %s2480_s12, %s2481_s13  }
  0x5f   : > { %231 = sbr.rel (%p2557_p8) target bundleno = 1107 (0x453), region = 40 }
  0x66   : > { %s2695_s17 = sand.u32 1, %s2466_s19   ;;  %p3596_p4 = scmp.ne.s32.totalorder %s3589_s24, 0 }
  0x67   : > { %s1824_s6 = sshll.u32 %s2695_s17, 7  ;;  %s234_s8 = scalar_lea.sflag [#allocation3], %s2695_s17 }
  0x68   : > { %s2699_s9 = scalar_lea.vmem [#allocation2], %s1824_s6 }
  0x69   : > { %2449 = dma.done.wait (%p3596_p4), %s234_s8, 2048  }
  0x6a   : > { %2451 = vsyncadd (%p3596_p4), %s234_s8, 4294965248  ;;  %p3597_p7 = scmp.eq.s32.totalorder %s2538_s22, 0 }
  0x6c   : > { %2453 = dma.done.wait (%p3597_p7), [#allocation6], 4096   ;;  %p3598_p8 = pmov %p3597_p7 }
  0x6d   : > { %v2483_v0 = vmov 0   ;;  %v2070_v1 = vld [vmem:[#allocation5 + $0x4] ss:$8 sps:$4 sm:$0xff]   ;;  %v2072_v2 = vld [vmem:[#allocation5] ss:$8 sps:$4 sm:$0xff]   ;;  %v2096_v19 = vld [vmem:[%s2699_s9 + $0x10] sm:$0xff]   ;;  %v325_v33 = vlaneseq }
  0x6e   : > { %2455 = vsyncadd (%p3598_p8), [#allocation6], 4294963200  ;;  %543 = vmatprep.mubr.bf16.mxu0 %v2483_v0  ;;  %511 = vmatprep.subr.bf16.mxu0 %v2070_v1  ;;  %v2073_v3 = vld [vmem:[#allocation5 + $0x14] ss:$8 sps:$4 sm:$0xff]   ;;  %v2075_v4 = vld [vmem:[#allocation5 + $0x10] ss:$8 sps:$4 sm:$0xff]  }
  0x6f   : > { %512 = vmatpush1.bf16.msra.mxu0 %v2072_v2  ;;  %v2076_v5 = vld [vmem:[#allocation5 + $0x24] ss:$8 sps:$4 sm:$0xff]   ;;  %v2078_v6 = vld [vmem:[#allocation5 + $0x20] ss:$8 sps:$4 sm:$0xff]   ;;  %v2079_v7 = vld [vmem:[#allocation5 + $0x34] ss:$8 sps:$4 sm:$0xff]  }
  0x70   : > { %513 = vmatprep.subr.bf16.mxu0 %v2073_v3  ;;  %v2081_v8 = vld [vmem:[#allocation5 + $0x30] ss:$8 sps:$4 sm:$0xff]   ;;  %v2082_v9 = vld [vmem:[#allocation5 + $0x44] ss:$8 sps:$4 sm:$0xff]   ;;  %v2084_v10 = vld [vmem:[#allocation5 + $0x40] ss:$8 sps:$4 sm:$0xff]  }
  0x71   : > { %v2085_v11 = vld [vmem:[#allocation5 + $0x54] ss:$8 sps:$4 sm:$0xff]   ;;  %v2087_v12 = vld [vmem:[#allocation5 + $0x50] ss:$8 sps:$4 sm:$0xff]   ;;  %v2088_v13 = vld [vmem:[#allocation5 + $0x64] ss:$8 sps:$4 sm:$0xff]  }
  0x72   : > { %v2090_v14 = vld [vmem:[#allocation5 + $0x60] ss:$8 sps:$4 sm:$0xff]   ;;  %v2091_v15 = vld [vmem:[#allocation5 + $0x74] ss:$8 sps:$4 sm:$0xff]   ;;  %v2093_v16 = vld [vmem:[#allocation5 + $0x70] ss:$8 sps:$4 sm:$0xff]  }
  0x73   : > { %514 = vmatpush1.bf16.msra.mxu0 %v2075_v4  ;;  %v2094_v17 = vld [vmem:[%s2699_s9] sm:$0xff]   ;;  %v2095_v18 = vld [vmem:[%s2699_s9 + $0x8] sm:$0xff]   ;;  %v2097_v20 = vld [vmem:[%s2699_s9 + $0x18] sm:$0xff]   ;;  %v326_v34 = vshrl.u32 %v325_v33, 7  ;;  %v705_v35 = vand.u32 127, %v325_v33  ;;  %s1827_s10 = sshll.u32 %s2695_s17, 8 }
  0x74   : > { %515 = vmatprep.subr.bf16.mxu0 %v2076_v5  ;;  %v2098_v21 = vld [vmem:[%s2699_s9 + $0x20] sm:$0xff]   ;;  %v2099_v22 = vld [vmem:[%s2699_s9 + $0x28] sm:$0xff]   ;;  %v2100_v23 = vld [vmem:[%s2699_s9 + $0x30] sm:$0xff]   ;;  %s3435_s28 = scalar_lea.vmem [#allocation8], %s1827_s10  ;;  %s1883_s14 = sshll.u32 %s2538_s22, 12 }
  0x75   : > { %v2101_v24 = vld [vmem:[%s2699_s9 + $0x38] sm:$0xff]   ;;  %v2102_v25 = vld [vmem:[%s2699_s9 + $0x40] sm:$0xff]   ;;  %v2103_v26 = vld [vmem:[%s2699_s9 + $0x48] sm:$0xff]   ;;  %v331_v36 = vsub.s32 1, %v326_v34  ;;  %v327_v38 = vsub.s32 0, %v326_v34  ;;  %v2744_v39 = vadd.s32 128, %v705_v35  ;;  %s3502_s23 = scalar_lea.hbm %s3555_s5, %s1883_s14 }
  0x76   : > { %v2104_v27 = vld [vmem:[%s2699_s9 + $0x50] sm:$0xff]   ;;  %v2105_v28 = vld [vmem:[%s2699_s9 + $0x58] sm:$0xff]   ;;  %v2106_v29 = vld [vmem:[%s2699_s9 + $0x60] sm:$0xff]   ;;  %s1723_s15 = sshll.u32 %s3435_s28, 4  ;;  %s1710_s22 = scalar_lea.sflag [#allocation4], %s2695_s17  ;;  %s3504_s15 = int_to_ptr.vmem [resolvable:$true] %s1723_s15 }
  0x77   : > { %516 = vmatpush1.bf16.msra.mxu0 %v2078_v6  ;;  %v2107_v30 = vld [vmem:[%s2699_s9 + $0x68] sm:$0xff]   ;;  %v2108_v31 = vld [vmem:[%s2699_s9 + $0x70] sm:$0xff]   ;;  %v2109_v32 = vld [vmem:[%s2699_s9 + $0x78] sm:$0xff]   ;;  %vm708_vm0 = vcmp.lt.s32.totalorder %v2744_v39, 192  ;;  %s2404_s7 = scalar_lea.vmem %s3504_s15, 4096  ;;  %p3659_p0 = scmp.ne.s32.totalorder %s3594_s29, 0 }
  0x78   : > { %517 = vmatprep.subr.bf16.mxu0 %v2079_v7  ;;  %v323_v37 = vld [vmem:[%s3552_s2] sm:$0x3]  ;;  %p2405_p11 = scmp.ne.s32.totalorder %s3504_s15, %s2404_s7  ;;  %s2484_s6 = smov [#allocation8]  }
  0x79   : > { %v2746_v40 = vrot.slane %v323_v37, %v331_v36  ;;  %v2748_v41 = vrot.slane %v323_v37, %v327_v38  ;;  %s2408_s8 = sshll.u32 %s2484_s6, 4  ;;  %s2409_s8 = int_to_ptr.vmem [resolvable:$false] %s2408_s8 }
  0x7a   : > { %p2406_p1 = pnand %p2405_p11, %p3659_p0  ;;  %s2410_s9 = scalar_lea.vmem %s2409_s8, 8192 }
  0x7b   : > { %518 = vmatpush1.bf16.msra.mxu0 %v2081_v8  ;;  %p2411_p5 = scmp.lt.s32.totalorder %s3504_s15, %s2409_s8  ;;  %p2412_p9 = scmp.lt.s32.totalorder %s2410_s9, %s2404_s7 }
  0x7c   : > { %519 = vmatprep.subr.bf16.mxu0 %v2082_v9  ;;  %p2407_p3 = pneg %p2406_p1 }
  0x7d   : > { %p2413_p12 = por %p2412_p9, %p2411_p5 }
  0x7f   : > { %520 = vmatpush1.bf16.msra.mxu0 %v2084_v10  ;;  %p2414_p2 = pnand %p2413_p12, %p2407_p3 }
  0x80   : > { %521 = vmatprep.subr.bf16.mxu0 %v2085_v11 }
  0x83   : > { %522 = vmatpush1.bf16.msra.mxu0 %v2087_v12 }
  0x84   : > { %523 = vmatprep.subr.bf16.mxu0 %v2088_v13 }
  0x87   : > { %524 = vmatpush1.bf16.msra.mxu0 %v2090_v14 }
  0x88   : > { %525 = vmatprep.subr.bf16.mxu0 %v2091_v15 }
  0x8b   : > { %526 = vmatpush1.bf16.msra.mxu0 %v2093_v16 }
  0x8e   : > { %544 = vmatmul.mubr.bf16.vlgmr.msra.gmra.mrb[0].mxu0 %v2094_v17 }
  0x8f   : > { %553 = vmatprep.mubr.bf16.mxu0 %v2483_v0 }
  0x96   : > { %554 = vmatmul.mubr.bf16.gmra.mrb[4].mxu0 %v2095_v18 }
  0x97   : > { %563 = vmatprep.mubr.bf16.mxu0 %v2483_v0 }
  0x9e   : > { %564 = vmatmul.mubr.bf16.gmra.mrb[8].mxu0 %v2096_v19 }
  0x9f   : > { %573 = vmatprep.mubr.bf16.mxu0 %v2483_v0 }
  0xa6   : > { %574 = vmatmul.mubr.bf16.gmra.mrb[12].mxu0 %v2097_v20 }
  0xa7   : > { %583 = vmatprep.mubr.bf16.mxu0 %v2483_v0 }
  0xae   : > { %584 = vmatmul.mubr.bf16.gmra.mrb[16].mxu0 %v2098_v21 }
  0xaf   : > { %593 = vmatprep.mubr.bf16.mxu0 %v2483_v0 }
  0xb6   : > { %594 = vmatmul.mubr.bf16.gmra.mrb[20].mxu0 %v2099_v22 }
  0xb7   : > { %603 = vmatprep.mubr.bf16.mxu0 %v2483_v0 }
  0xbe   : > { %604 = vmatmul.mubr.bf16.gmra.mrb[24].mxu0 %v2100_v23 }
  0xbf   : > { %613 = vmatprep.mubr.bf16.mxu0 %v2483_v0 }
  0xc6   : > { %614 = vmatmul.mubr.bf16.gmra.mrb[28].mxu0 %v2101_v24 }
  0xc7   : > { %623 = vmatprep.mubr.bf16.mxu0 %v2483_v0 }
  0xce   : > { %624 = vmatmul.mubr.bf16.gmra.mrb[32].mxu0 %v2102_v25 }
  0xcf   : > { %633 = vmatprep.mubr.bf16.mxu0 %v2483_v0 }
  0xd6   : > { %634 = vmatmul.mubr.bf16.gmra.mrb[36].mxu0 %v2103_v26 }
  0xd7   : > { %643 = vmatprep.mubr.bf16.mxu0 %v2483_v0 }
  0xde   : > { %644 = vmatmul.mubr.bf16.gmra.mrb[40].mxu0 %v2104_v27 }
  0xdf   : > { %653 = vmatprep.mubr.bf16.mxu0 %v2483_v0 }
  0xe6   : > { %654 = vmatmul.mubr.bf16.gmra.mrb[44].mxu0 %v2105_v28 }
  0xe7   : > { %663 = vmatprep.mubr.bf16.mxu0 %v2483_v0 }
  0xee   : > { %664 = vmatmul.mubr.bf16.gmra.mrb[48].mxu0 %v2106_v29 }
  0xef   : > { %673 = vmatprep.mubr.bf16.mxu0 %v2483_v0 }
  0xf6   : > { %674 = vmatmul.mubr.bf16.gmra.mrb[52].mxu0 %v2107_v30 }
  0xf7   : > { %683 = vmatprep.mubr.bf16.mxu0 %v2483_v0 }
  0xfe   : > { %684 = vmatmul.mubr.bf16.gmra.mrb[56].mxu0 %v2108_v31 }
  0xff   : > { %693 = vmatprep.mubr.bf16.mxu0 %v2483_v0 }
 0x106   : > { %694 = vmatmul.mubr.bf16.gmra.mrb[60].mxu0 %v2109_v32 }
 0x161   : > { %v545_v42 = vpop.f32.mrb[0].mxu0 }
 0x162   : > { %v547_v43 = vpop.f32.mrb[1].mxu0  ;;  %v2753_v46 = vadd.f32 %v545_v42, %v2748_v41 }
 0x163   : > { %v548_v44 = vadd.f32 %v547_v43, %v2746_v40  ;;  %v549_v45 = vpop.f32.mrb[2].mxu0 }
 0x164   : > { %v551_v47 = vpop.f32.mrb[3].mxu0  ;;  %v2767_v52 = vadd.f32 %v549_v45, %v2748_v41 }
 0x165   : > { %v552_v48 = vadd.f32 %v551_v47, %v2746_v40  ;;  %v2758_v49 = vsel %vm708_vm0, %v548_v44, -1e+30 }
 0x166   : > { %v773_v50 = vmax.f32 %v2753_v46, %v2758_v49 }
 0x167   : > { %v2764_v51 = vsel %vm708_vm0, %v552_v48, -1e+30 }
 0x168   : > { %774 = vmax.xlane.f32.xlu0 %v773_v50  ;;  %v776_v55 = vmax.f32 %v2767_v52, %v2764_v51 }
 0x169   : > { %v555_v53 = vpop.f32.mrb[4].mxu0 }
 0x16a   : > { %v557_v54 = vpop.f32.mrb[5].mxu0  ;;  %v2773_v58 = vadd.f32 %v555_v53, %v2748_v41 }
 0x16b   : > { %v558_v56 = vadd.f32 %v557_v54, %v2746_v40  ;;  %v559_v57 = vpop.f32.mrb[6].mxu0 }
 0x16c   : > { %v561_v59 = vpop.f32.mrb[7].mxu0  ;;  %777 = vmax.xlane.f32.xlu0 %v776_v55  ;;  %v2787_v0 = vadd.f32 %v559_v57, %v2748_v41 }
 0x16d   : > { %v562_v60 = vadd.f32 %v561_v59, %v2746_v40  ;;  %v2778_v61 = vsel %vm708_vm0, %v558_v56, -1e+30 }
 0x16e   : > { %v779_v62 = vmax.f32 %v2773_v58, %v2778_v61 }
 0x16f   : > { %v2784_v63 = vsel %vm708_vm0, %v562_v60, -1e+30 }
 0x170   : > { %780 = vmax.xlane.f32.xlu1 %v779_v62  ;;  %v782_v4 = vmax.f32 %v2787_v0, %v2784_v63 }
 0x171   : > { %v565_v1 = vpop.f32.mrb[8].mxu0 }
 0x172   : > { %v2790_v2 = vadd.f32 %v565_v1, %v2748_v41  ;;  %v567_v3 = vpop.f32.mrb[9].mxu0 }
 0x173   : > { %v568_v5 = vadd.f32 %v567_v3, %v2746_v40  ;;  %v569_v6 = vpop.f32.mrb[10].mxu0 }
 0x174   : > { %v571_v7 = vpop.f32.mrb[11].mxu0  ;;  %783 = vmax.xlane.f32.xlu1 %v782_v4  ;;  %v2801_v10 = vadd.f32 %v569_v6, %v2748_v41 }
 0x175   : > { %v572_v8 = vadd.f32 %v571_v7, %v2746_v40  ;;  %v2798_v9 = vsel %vm708_vm0, %v568_v5, -1e+30 }
 0x176   : > { %v785_v11 = vmax.f32 %v2790_v2, %v2798_v9 }
 0x177   : > { %v2807_v12 = vsel %vm708_vm0, %v572_v8, -1e+30 }
 0x178   : > { %786 = vmax.xlane.f32.xlu0 %v785_v11  ;;  %v788_v13 = vmax.f32 %v2801_v10, %v2807_v12 }
 0x179   : > { %v575_v14 = vpop.f32.mrb[12].mxu0 }
 0x17a   : > { %v2812_v15 = vadd.f32 %v575_v14, %v2748_v41  ;;  %v577_v16 = vpop.f32.mrb[13].mxu0  ;;  %789 = vmax.xlane.f32.xlu1 %v788_v13 }
 0x17b   : > { %v578_v17 = vadd.f32 %v577_v16, %v2746_v40  ;;  %v579_v18 = vpop.f32.mrb[14].mxu0 }
 0x17c   : > { %v581_v19 = vpop.f32.mrb[15].mxu0  ;;  %v2821_v22 = vadd.f32 %v579_v18, %v2748_v41 }
 0x17d   : > { %v582_v20 = vadd.f32 %v581_v19, %v2746_v40  ;;  %v2818_v21 = vsel %vm708_vm0, %v578_v17, -1e+30 }
 0x17e   : > { %v791_v23 = vmax.f32 %v2812_v15, %v2818_v21 }
 0x17f   : > { %v2827_v24 = vsel %vm708_vm0, %v582_v20, -1e+30 }
 0x180   : > { %792 = vmax.xlane.f32.xlu0 %v791_v23  ;;  %v794_v25 = vmax.f32 %v2821_v22, %v2827_v24 }
 0x181   : > { %v585_v26 = vpop.f32.mrb[16].mxu0 }
 0x182   : > { %v2832_v27 = vadd.f32 %v585_v26, %v2748_v41  ;;  %v587_v28 = vpop.f32.mrb[17].mxu0  ;;  %795 = vmax.xlane.f32.xlu1 %v794_v25 }
 0x183   : > { %v588_v29 = vadd.f32 %v587_v28, %v2746_v40  ;;  %v589_v30 = vpop.f32.mrb[18].mxu0 }
 0x184   : > { %v2836_v31 = vadd.f32 %v589_v30, %v2748_v41  ;;  %v591_v32 = vpop.f32.mrb[19].mxu0 }
 0x185   : > { %v592_v33 = vadd.f32 %v591_v32, %v2746_v40  ;;  %v2841_v34 = vsel %vm708_vm0, %v588_v29, -1e+30 }
 0x186   : > { %v797_v35 = vmax.f32 %v2832_v27, %v2841_v34 }
 0x187   : > { %v2847_v36 = vsel %vm708_vm0, %v592_v33, -1e+30 }
 0x188   : > { %798 = vmax.xlane.f32.xlu0 %v797_v35  ;;  %v800_v37 = vmax.f32 %v2836_v31, %v2847_v36 }
 0x189   : > { %v595_v38 = vpop.f32.mrb[20].mxu0 }
 0x18a   : > { %v2852_v42 = vadd.f32 %v595_v38, %v2748_v41  ;;  %v597_v43 = vpop.f32.mrb[21].mxu0  ;;  %801 = vmax.xlane.f32.xlu1 %v800_v37 }
 0x18b   : > { %v598_v44 = vadd.f32 %v597_v43, %v2746_v40  ;;  %v599_v45 = vpop.f32.mrb[22].mxu0 }
 0x18c   : > { %v2856_v47 = vadd.f32 %v599_v45, %v2748_v41  ;;  %v601_v48 = vpop.f32.mrb[23].mxu0 }
 0x18d   : > { %v602_v50 = vadd.f32 %v601_v48, %v2746_v40  ;;  %v2861_v53 = vsel %vm708_vm0, %v598_v44, -1e+30 }
 0x18e   : > { %v803_v54 = vmax.f32 %v2852_v42, %v2861_v53 }
 0x18f   : > { %v2867_v55 = vsel %vm708_vm0, %v602_v50, -1e+30 }
 0x190   : > { %804 = vmax.xlane.f32.xlu0 %v803_v54  ;;  %v806_v56 = vmax.f32 %v2856_v47, %v2867_v55 }
 0x191   : > { %v605_v57 = vpop.f32.mrb[24].mxu0 }
 0x192   : > { %v2872_v59 = vadd.f32 %v605_v57, %v2748_v41  ;;  %v607_v60 = vpop.f32.mrb[25].mxu0  ;;  %807 = vmax.xlane.f32.xlu1 %v806_v56 }
 0x193   : > { %v608_v62 = vadd.f32 %v607_v60, %v2746_v40  ;;  %v609_v1 = vpop.f32.mrb[26].mxu0 }
 0x194   : > { %v2876_v3 = vadd.f32 %v609_v1, %v2748_v41  ;;  %v611_v4 = vpop.f32.mrb[27].mxu0 }
 0x195   : > { %v612_v5 = vadd.f32 %v611_v4, %v2746_v40  ;;  %v2881_v6 = vsel %vm708_vm0, %v608_v62, -1e+30 }
 0x196   : > { %v809_v7 = vmax.f32 %v2872_v59, %v2881_v6 }
 0x197   : > { %v2887_v8 = vsel %vm708_vm0, %v612_v5, -1e+30 }
 0x198   : > { %810 = vmax.xlane.f32.xlu0 %v809_v7  ;;  %v812_v11 = vmax.f32 %v2876_v3, %v2887_v8 }
 0x199   : > { %v615_v13 = vpop.f32.mrb[28].mxu0 }
 0x19a   : > { %v2892_v14 = vadd.f32 %v615_v13, %v2748_v41  ;;  %v617_v16 = vpop.f32.mrb[29].mxu0  ;;  %813 = vmax.xlane.f32.xlu1 %v812_v11 }
 0x19b   : > { %v618_v17 = vadd.f32 %v617_v16, %v2746_v40  ;;  %v619_v18 = vpop.f32.mrb[30].mxu0 }
 0x19c   : > { %v2896_v19 = vadd.f32 %v619_v18, %v2748_v41  ;;  %v621_v20 = vpop.f32.mrb[31].mxu0 }
 0x19d   : > { %v622_v23 = vadd.f32 %v621_v20, %v2746_v40  ;;  %v2901_v25 = vsel %vm708_vm0, %v618_v17, -1e+30 }
 0x19e   : > { %v815_v26 = vmax.f32 %v2892_v14, %v2901_v25 }
 0x19f   : > { %v2907_v28 = vsel %vm708_vm0, %v622_v23, -1e+30 }
 0x1a0   : > { %816 = vmax.xlane.f32.xlu0 %v815_v26  ;;  %v818_v29 = vmax.f32 %v2896_v19, %v2907_v28 }
 0x1a1   : > { %v625_v30 = vpop.f32.mrb[32].mxu0 }
 0x1a2   : > { %v2912_v32 = vadd.f32 %v625_v30, %v2748_v41  ;;  %v627_v33 = vpop.f32.mrb[33].mxu0  ;;  %819 = vmax.xlane.f32.xlu1 %v818_v29 }
 0x1a3   : > { %v628_v35 = vadd.f32 %v627_v33, %v2746_v40  ;;  %v629_v37 = vpop.f32.mrb[34].mxu0 }
 0x1a4   : > { %3599 = vst [vmem:[#allocation12_spill] sm:$0xff] %v2912_v32  ;;  %v2916_v38 = vadd.f32 %v629_v37, %v2748_v41  ;;  %v631_v43 = vpop.f32.mrb[35].mxu0 }
 0x1a5   : > { %v632_v44 = vadd.f32 %v631_v43, %v2746_v40  ;;  %v2921_v45 = vsel %vm708_vm0, %v628_v35, -1e+30 }
 0x1a6   : > { %3600 = vst [vmem:[#allocation13_spill] sm:$0xff] %v2916_v38  ;;  %3601 = vst [vmem:[#allocation14_spill] sm:$0xff] %v2921_v45  ;;  %v821_v48 = vmax.f32 %v2912_v32, %v2921_v45 }
 0x1a7   : > { %v2927_v50 = vsel %vm708_vm0, %v632_v44, -1e+30 }
 0x1a8   : > { %3602 = vst [vmem:[#allocation15_spill] sm:$0xff] %v2927_v50  ;;  %822 = vmax.xlane.f32.xlu0 %v821_v48  ;;  %v824_v54 = vmax.f32 %v2916_v38, %v2927_v50 }
 0x1a9   : > { %v635_v56 = vpop.f32.mrb[36].mxu0 }
 0x1aa   : > { %v2932_v57 = vadd.f32 %v635_v56, %v2748_v41  ;;  %v637_v60 = vpop.f32.mrb[37].mxu0  ;;  %825 = vmax.xlane.f32.xlu1 %v824_v54 }
 0x1ab   : > { %v638_v62 = vadd.f32 %v637_v60, %v2746_v40  ;;  %v639_v1 = vpop.f32.mrb[38].mxu0 }
 0x1ac   : > { %3603 = vst [vmem:[#allocation16_spill] sm:$0xff] %v2932_v57  ;;  %v2936_v4 = vadd.f32 %v639_v1, %v2748_v41  ;;  %v641_v5 = vpop.f32.mrb[39].mxu0 }
 0x1ad   : > { %v642_v7 = vadd.f32 %v641_v5, %v2746_v40  ;;  %v2941_v11 = vsel %vm708_vm0, %v638_v62, -1e+30 }
 0x1ae   : > { %3604 = vst [vmem:[#allocation17_spill] sm:$0xff] %v2936_v4  ;;  %3605 = vst [vmem:[#allocation18_spill] sm:$0xff] %v2941_v11  ;;  %v827_v13 = vmax.f32 %v2932_v57, %v2941_v11 }
 0x1af   : > { %v2947_v16 = vsel %vm708_vm0, %v642_v7, -1e+30 }
 0x1b0   : > { %3606 = vst [vmem:[#allocation19_spill] sm:$0xff] %v2947_v16  ;;  %828 = vmax.xlane.f32.xlu0 %v827_v13  ;;  %v830_v17 = vmax.f32 %v2936_v4, %v2947_v16  ;;  %v2115_v16 = vld [vmem:[#allocation7 + $0x10] sm:$0xff]  }
 0x1b1   : > { %v645_v18 = vpop.f32.mrb[40].mxu0 }
 0x1b2   : > { %v2952_v20 = vadd.f32 %v645_v18, %v2748_v41  ;;  %v647_v23 = vpop.f32.mrb[41].mxu0  ;;  %831 = vmax.xlane.f32.xlu1 %v830_v17 }
 0x1b3   : > { %v648_v26 = vadd.f32 %v647_v23, %v2746_v40  ;;  %v649_v29 = vpop.f32.mrb[42].mxu0 }
 0x1b4   : > { %3607 = vst [vmem:[#allocation20_spill] sm:$0xff] %v2952_v20  ;;  %v2956_v30 = vadd.f32 %v649_v29, %v2748_v41  ;;  %v651_v33 = vpop.f32.mrb[43].mxu0 }
 0x1b5   : > { %v652_v35 = vadd.f32 %v651_v33, %v2746_v40  ;;  %v2961_v37 = vsel %vm708_vm0, %v648_v26, -1e+30 }
 0x1b6   : > { %3608 = vst [vmem:[#allocation21_spill] sm:$0xff] %v2956_v30  ;;  %3609 = vst [vmem:[#allocation22_spill] sm:$0xff] %v2961_v37  ;;  %v833_v43 = vmax.f32 %v2952_v20, %v2961_v37  ;;  %v2113_v37 = vld [vmem:[#allocation7 + $0x8] sm:$0xff]   ;;  %v2114_v20 = vld [vmem:[#allocation7 + $0x50] sm:$0xff]  }
 0x1b7   : > { %v2967_v44 = vsel %vm708_vm0, %v652_v35, -1e+30 }
 0x1b8   : > { %3610 = vst [vmem:[#allocation23_spill] sm:$0xff] %v2967_v44  ;;  %834 = vmax.xlane.f32.xlu0 %v833_v43  ;;  %v836_v48 = vmax.f32 %v2956_v30, %v2967_v44  ;;  %v2111_v44 = vld [vmem:[#allocation7] sm:$0xff]   ;;  %v2112_v30 = vld [vmem:[#allocation7 + $0x48] sm:$0xff]  }
 0x1b9   : > { %v655_v54 = vpop.f32.mrb[44].mxu0 }
 0x1ba   : > { %v2972_v56 = vadd.f32 %v655_v54, %v2748_v41  ;;  %v657_v60 = vpop.f32.mrb[45].mxu0  ;;  %837 = vmax.xlane.f32.xlu1 %v836_v48 }
 0x1bb   : > { %v658_v62 = vadd.f32 %v657_v60, %v2746_v40  ;;  %v659_v1 = vpop.f32.mrb[46].mxu0 }
 0x1bc   : > { %3611 = vst [vmem:[#allocation24_spill] sm:$0xff] %v2972_v56  ;;  %v2976_v5 = vadd.f32 %v659_v1, %v2748_v41  ;;  %v661_v7 = vpop.f32.mrb[47].mxu0 }
 0x1bd   : > { %v662_v13 = vadd.f32 %v661_v7, %v2746_v40  ;;  %v2981_v17 = vsel %vm708_vm0, %v658_v62, -1e+30 }
 0x1be   : > { %3612 = vst [vmem:[#allocation25_spill] sm:$0xff] %v2976_v5  ;;  %3613 = vst [vmem:[#allocation26_spill] sm:$0xff] %v2981_v17  ;;  %v839_v18 = vmax.f32 %v2972_v56, %v2981_v17  ;;  %v2110_v56 = vld [vmem:[#allocation7 + $0x40] sm:$0xff]  }
 0x1bf   : > { %v2987_v23 = vsel %vm708_vm0, %v662_v13, -1e+30  ;;  %1884 = vmatprep.subr.bf16.mxu1 %v2110_v56 }
 0x1c0   : > { %3614 = vst [vmem:[#allocation27_spill] sm:$0xff] %v2987_v23  ;;  %840 = vmax.xlane.f32.xlu0 %v839_v18  ;;  %v842_v26 = vmax.f32 %v2976_v5, %v2987_v23  ;;  %1885 = vmatpush3.bf16.msra.mxu1 %v2111_v44 }
 0x1c1   : > { %v665_v29 = vpop.f32.mrb[48].mxu0  ;;  %1886 = vmatprep.subr.bf16.mxu1 %v2112_v30 }
 0x1c2   : > { %843 = vmax.xlane.f32.xlu1 %v842_v26  ;;  %v667_v33 = vpop.f32.mrb[49].mxu0 }
 0x1c3   : > { %v2991_v35 = vpop.f32.mrb[50].mxu0 }
 0x1c4   : > { %v671_v43 = vpop.f32.mrb[51].mxu0  ;;  %1887 = vmatpush3.bf16.msra.mxu1 %v2113_v37 }
 0x1c5   : > { %1888 = vmatprep.subr.bf16.mxu1 %v2114_v20 }
 0x1c8   : > { %1889 = vmatpush3.bf16.msra.mxu1 %v2115_v16 }
 0x1c9   : > { %v2993_v48 = vpop.f32.mrb[52].mxu0 }
 0x1ca   : > { %v677_v54 = vpop.f32.mrb[53].mxu0 }
 0x1cb   : > { %v2995_v60 = vpop.f32.mrb[54].mxu0 }
 0x1cc   : > { %v2997_v62 = vpop.f32.mrb[55].mxu0 }
 0x1d1   : > { %v2999_v1 = vpop.f32.mrb[56].mxu0 }
 0x1d2   : > { %v3001_v7 = vpop.f32.mrb[57].mxu0 }
 0x1d3   : > { %v3003_v13 = vpop.f32.mrb[58].mxu0 }
 0x1d4   : > { %v3005_v18 = vpop.f32.mrb[59].mxu0 }
 0x1d9   : > { %v3007_v26 = vpop.f32.mrb[60].mxu0 }
 0x1da   : > { %v3009_v23 = vpop.f32.mrb[61].mxu0 }
 0x1db   : > { %v3011_v5 = vpop.f32.mrb[62].mxu0 }
 0x1dc   : > { %v3013_v17 = vpop.f32.mrb[63].mxu0 }
 0x1f5   : > { %v775_v4 = vpop.xlane.xlu0 %774 }
 0x1f6   : > { %v869_v11 = vsub.f32 %v2753_v46, %v775_v4  ;;  %v870_v57 = vsub.f32 %v2758_v49, %v775_v4 }
 0x1f8   : > { %v933_v50 = vmul.f32 1.442695, %v869_v11  ;;  %v935_v38 = vmul.f32 1.442695, %v870_v57  ;;  %v668_v57 = vadd.f32 %v667_v33, %v2746_v40  ;;  %v672_v33 = vadd.f32 %v671_v43, %v2746_v40 }
 0x1f9   : > { %v778_v45 = vpop.xlane.xlu0 %777  ;;  %v3051_v43 = vadd.f32 %v2991_v35, %v2748_v41 }
 0x1fa   : > { %2126 = vpow2.f32 %v933_v50  ;;  %v871_v32 = vsub.f32 %v2767_v52, %v778_v45  ;;  %v872_v44 = vsub.f32 %v2764_v51, %v778_v45 }
 0x1fb   : > { %2128 = vpow2.f32 %v935_v38 }
 0x1fc   : > { %v937_v30 = vmul.f32 1.442695, %v871_v32  ;;  %v939_v56 = vmul.f32 1.442695, %v872_v44  ;;  %v3025_v32 = vadd.f32 %v665_v29, %v2748_v41 }
 0x1fd   : > { %v781_v37 = vpop.xlane.xlu1 %780 }
 0x1fe   : > { %2130 = vpow2.f32 %v937_v30  ;;  %v873_v16 = vsub.f32 %v2773_v58, %v781_v37  ;;  %v874_v20 = vsub.f32 %v2778_v61, %v781_v37  ;;  %v3031_v61 = vsel %vm708_vm0, %v668_v57, -1e+30 }
 0x1ff   : > { %2132 = vpow2.f32 %v939_v56  ;;  %v678_v30 = vadd.f32 %v677_v54, %v2746_v40  ;;  %v845_v56 = vmax.f32 %v3025_v32, %v3031_v61 }
 0x200   : > { %v941_v46 = vmul.f32 1.442695, %v873_v16  ;;  %v943_v49 = vmul.f32 1.442695, %v874_v20 }
 0x201   : > { %v784_v4 = vpop.xlane.xlu1 %783  ;;  %v3067_v35 = vsel %vm708_vm0, %v678_v30, -1e+30 }
 0x202   : > { %2134 = vpow2.f32 %v941_v46  ;;  %v875_v52 = vsub.f32 %v2787_v0, %v784_v4  ;;  %v876_v51 = vsub.f32 %v2784_v63, %v784_v4  ;;  %v3057_v4 = vadd.f32 %v2993_v48, %v2748_v41 }
 0x203   : > { %2136 = vpow2.f32 %v943_v49 }
 0x204   : > { %v3027_v38 = vpop.eup %2126  ;;  %v945_v58 = vmul.f32 1.442695, %v875_v52  ;;  %v947_v45 = vmul.f32 1.442695, %v876_v51 }
 0x205   : > { %v3033_v50 = vpop.eup %2128  ;;  %v787_v11 = vpop.xlane.xlu0 %786 }
 0x206   : > { %2138 = vpow2.f32 %v945_v58  ;;  %v877_v0 = vsub.f32 %v2790_v2, %v787_v11  ;;  %v878_v63 = vsub.f32 %v2798_v9, %v787_v11  ;;  %v1061_v29 = vadd.f32 %v3033_v50, %v3027_v38 }
 0x207   : > { %2140 = vpow2.f32 %v947_v45  ;;  %v790_v44 = vpop.xlane.xlu1 %789 }
 0x208   : > { %v3043_v37 = vpop.eup %2130  ;;  %v949_v16 = vmul.f32 1.442695, %v877_v0  ;;  %v951_v20 = vmul.f32 1.442695, %v878_v63  ;;  %v879_v2 = vsub.f32 %v2801_v10, %v790_v44  ;;  %v880_v9 = vsub.f32 %v2807_v12, %v790_v44  ;;  %1062 = vadd.xlane.f32.xlu0 %v1061_v29 }
 0x209   : > { %v3047_v46 = vpop.eup %2132  ;;  %v3061_v10 = vsel %vm708_vm0, %v672_v33, -1e+30  ;;  %v682_v0 = vadd.f32 %v2997_v62, %v2746_v40  ;;  %v688_v29 = vadd.f32 %v3001_v7, %v2746_v40  ;;  %v851_v33 = vmax.f32 %v3057_v4, %v3067_v35 }
 0x20a   : > { %2142 = vpow2.f32 %v949_v16  ;;  %v953_v54 = vmul.f32 1.442695, %v879_v2  ;;  %v955_v49 = vmul.f32 1.442695, %v880_v9  ;;  %v1064_v57 = vadd.f32 %v3047_v46, %v3043_v37 }
 0x20b   : > { %2144 = vpow2.f32 %v951_v20  ;;  %v848_v11 = vmax.f32 %v3051_v43, %v3061_v10  ;;  %v3091_v62 = vadd.f32 %v2995_v60, %v2748_v41  ;;  %v3107_v60 = vsel %vm708_vm0, %v688_v29, -1e+30 }
 0x20c   : > { %v3063_v12 = vpop.eup %2134  ;;  %2146 = vpow2.f32 %v953_v54  ;;  %846 = vmax.xlane.f32.xlu0 %v845_v56  ;;  %1065 = vadd.xlane.f32.xlu1 %v1064_v57  ;;  %v2116_v57 = vld [vmem:[#allocation7 + $0x58] sm:$0xff]  }
 0x20d   : > { %v3069_v52 = vpop.eup %2136  ;;  %2148 = vpow2.f32 %v955_v49  ;;  %v793_v51 = vpop.xlane.xlu0 %792  ;;  %1890 = vmatprep.subr.bf16.mxu1 %v2116_v57 }
 0x20e   : > { %v881_v48 = vsub.f32 %v2812_v15, %v793_v51  ;;  %v882_v58 = vsub.f32 %v2818_v21, %v793_v51  ;;  %v1067_v45 = vadd.f32 %v3069_v52, %v3063_v12 }
 0x20f   : > { %v796_v63 = vpop.xlane.xlu1 %795 }
 0x210   : > { %v3083_v44 = vpop.eup %2138  ;;  %v957_v15 = vmul.f32 1.442695, %v881_v48  ;;  %v959_v21 = vmul.f32 1.442695, %v882_v58  ;;  %v883_v30 = vsub.f32 %v2821_v22, %v796_v63  ;;  %v884_v56 = vsub.f32 %v2827_v24, %v796_v63  ;;  %1068 = vadd.xlane.f32.xlu0 %v1067_v45  ;;  %849 = vmax.xlane.f32.xlu1 %v848_v11  ;;  %v2117_v11 = vld [vmem:[#allocation7 + $0x18] sm:$0xff]  }
 0x211   : > { %v3087_v16 = vpop.eup %2140  ;;  %v3097_v22 = vadd.f32 %v2999_v1, %v2748_v41  ;;  %v3101_v24 = vsel %vm708_vm0, %v682_v0, -1e+30  ;;  %v692_v63 = vadd.f32 %v3005_v18, %v2746_v40  ;;  %1891 = vmatpush3.bf16.msra.mxu1 %v2117_v11  ;;  %v2118_v18 = vld [vmem:[#allocation7 + $0x60] sm:$0xff]  }
 0x212   : > { %2150 = vpow2.f32 %v957_v15  ;;  %v961_v7 = vmul.f32 1.442695, %v883_v30  ;;  %v963_v20 = vmul.f32 1.442695, %v884_v56  ;;  %v1070_v2 = vadd.f32 %v3087_v16, %v3083_v44  ;;  %1892 = vmatprep.subr.bf16.mxu1 %v2118_v18 }
 0x213   : > { %2152 = vpow2.f32 %v959_v21  ;;  %v854_v58 = vmax.f32 %v3091_v62, %v3101_v24  ;;  %v3131_v56 = vadd.f32 %v3003_v13, %v2748_v41  ;;  %v3169_v18 = vadd.f32 %v3011_v5, %v2748_v41 }
 0x214   : > { %v3103_v9 = vpop.eup %2142  ;;  %2154 = vpow2.f32 %v961_v7  ;;  %852 = vmax.xlane.f32.xlu0 %v851_v33  ;;  %1071 = vadd.xlane.f32.xlu1 %v1070_v2  ;;  %v698_v33 = vadd.f32 %v3009_v23, %v2746_v40  ;;  %v2119_v2 = vld [vmem:[#allocation7 + $0x20] sm:$0xff]  }
 0x215   : > { %v3109_v54 = vpop.eup %2144  ;;  %2156 = vpow2.f32 %v963_v20  ;;  %v799_v49 = vpop.xlane.xlu0 %798  ;;  %1893 = vmatpush3.bf16.msra.mxu1 %v2119_v2 }
 0x216   : > { %v3111_v1 = vpop.eup %2146  ;;  %v885_v51 = vsub.f32 %v2832_v27, %v799_v49  ;;  %v886_v48 = vsub.f32 %v2841_v34, %v799_v49  ;;  %v1073_v45 = vadd.f32 %v3109_v54, %v3103_v9  ;;  %v857_v27 = vmax.f32 %v3097_v22, %v3107_v60 }
 0x217   : > { %v3119_v0 = vpop.eup %2148  ;;  %v802_v29 = vpop.xlane.xlu1 %801  ;;  %v3147_v49 = vsel %vm708_vm0, %v698_v33, -1e+30  ;;  %v702_v33 = vadd.f32 %v3013_v17, %v2746_v40 }
 0x218   : > { %v965_v34 = vmul.f32 1.442695, %v885_v51  ;;  %v967_v15 = vmul.f32 1.442695, %v886_v48  ;;  %v887_v21 = vsub.f32 %v2836_v31, %v802_v29  ;;  %v888_v30 = vsub.f32 %v2847_v36, %v802_v29  ;;  %855 = vmax.xlane.f32.xlu1 %v854_v58  ;;  %1074 = vadd.xlane.f32.xlu0 %v1073_v45 }
 0x219   : > { %v1076_v20 = vadd.f32 %v3119_v0, %v3111_v1  ;;  %v3137_v31 = vadd.f32 %v3007_v26, %v2748_v41  ;;  %v3141_v36 = vsel %vm708_vm0, %v692_v63, -1e+30  ;;  %v2120_v63 = vld [vmem:[#allocation7 + $0x68] sm:$0xff]  }
 0x21a   : > { %2158 = vpow2.f32 %v965_v34  ;;  %v969_v23 = vmul.f32 1.442695, %v887_v21  ;;  %v971_v7 = vmul.f32 1.442695, %v888_v30  ;;  %v860_v45 = vmax.f32 %v3131_v56, %v3141_v36  ;;  %1894 = vmatprep.subr.bf16.mxu1 %v2120_v63 }
 0x21b   : > { %2160 = vpow2.f32 %v967_v15  ;;  %v863_v34 = vmax.f32 %v3137_v31, %v3147_v49  ;;  %v2121_v15 = vld [vmem:[#allocation7 + $0x28] sm:$0xff]  }
 0x21c   : > { %v3143_v13 = vpop.eup %2150  ;;  %2162 = vpow2.f32 %v969_v23  ;;  %1077 = vadd.xlane.f32.xlu1 %v1076_v20  ;;  %858 = vmax.xlane.f32.xlu0 %v857_v27 }
 0x21d   : > { %v3149_v57 = vpop.eup %2152  ;;  %2164 = vpow2.f32 %v971_v7  ;;  %v805_v51 = vpop.xlane.xlu0 %804  ;;  %1895 = vmatpush3.bf16.msra.mxu1 %v2121_v15  ;;  %v2122_v7 = vld [vmem:[#allocation7 + $0x70] sm:$0xff]  }
 0x21e   : > { %v3151_v26 = vpop.eup %2154  ;;  %v889_v48 = vsub.f32 %v2852_v42, %v805_v51  ;;  %v890_v58 = vsub.f32 %v2861_v53, %v805_v51  ;;  %v1079_v11 = vadd.f32 %v3149_v57, %v3143_v13  ;;  %1896 = vmatprep.subr.bf16.mxu1 %v2122_v7 }
 0x21f   : > { %v3159_v29 = vpop.eup %2156  ;;  %v808_v27 = vpop.xlane.xlu1 %807 }
 0x220   : > { %v973_v42 = vmul.f32 1.442695, %v889_v48  ;;  %v975_v21 = vmul.f32 1.442695, %v890_v58  ;;  %v891_v53 = vsub.f32 %v2856_v47, %v808_v27  ;;  %v892_v30 = vsub.f32 %v2867_v55, %v808_v27  ;;  %861 = vmax.xlane.f32.xlu1 %v860_v45  ;;  %1080 = vadd.xlane.f32.xlu0 %v1079_v11  ;;  %v2123_v55 = vld [vmem:[#allocation7 + $0x30] sm:$0xff]   ;;  %v2124_v45 = vld [vmem:[#allocation7 + $0x78] sm:$0xff]  }
 0x221   : > { %v1082_v23 = vadd.f32 %v3159_v29, %v3151_v26  ;;  %v3175_v47 = vsel %vm708_vm0, %v702_v33, -1e+30  ;;  %1897 = vmatpush3.bf16.msra.mxu1 %v2123_v55  ;;  %v2125_v33 = vld [vmem:[#allocation7 + $0x38] sm:$0xff]  }
 0x222   : > { %2166 = vpow2.f32 %v973_v42  ;;  %v977_v40 = vmul.f32 1.442695, %v891_v53  ;;  %v979_v17 = vmul.f32 1.442695, %v892_v30  ;;  %v866_v39 = vmax.f32 %v3169_v18, %v3175_v47  ;;  %1898 = vmatprep.subr.bf16.mxu1 %v2124_v45 }
 0x223   : > { %2168 = vpow2.f32 %v975_v21 }
 0x224   : > { %v3177_v20 = vpop.eup %2158  ;;  %2170 = vpow2.f32 %v977_v40  ;;  %1083 = vadd.xlane.f32.xlu1 %v1082_v23  ;;  %864 = vmax.xlane.f32.xlu0 %v863_v34 }
 0x225   : > { %v3179_v41 = vpop.eup %2160  ;;  %2172 = vpow2.f32 %v979_v17  ;;  %v811_v5 = vpop.xlane.xlu0 %810  ;;  %1899 = vmatpush3.bf16.msra.mxu1 %v2125_v33 }
 0x226   : > { %v3181_v2 = vpop.eup %2162  ;;  %v893_v51 = vsub.f32 %v2872_v59, %v811_v5  ;;  %v894_v48 = vsub.f32 %v2881_v6, %v811_v5  ;;  %v1085_v58 = vadd.f32 %v3179_v41, %v3177_v20 }
 0x227   : > { %v3189_v11 = vpop.eup %2164  ;;  %v814_v63 = vpop.xlane.xlu1 %813 }
 0x228   : > { %v981_v27 = vmul.f32 1.442695, %v893_v51  ;;  %v983_v34 = vmul.f32 1.442695, %v894_v48  ;;  %v895_v15 = vsub.f32 %v2876_v3, %v814_v63  ;;  %v896_v59 = vsub.f32 %v2887_v8, %v814_v63  ;;  %867 = vmax.xlane.f32.xlu1 %v866_v39  ;;  %1086 = vadd.xlane.f32.xlu0 %v1085_v58 }
 0x229   : > { %v1088_v21 = vadd.f32 %v3189_v11, %v3181_v2 }
 0x22a   : > { %2174 = vpow2.f32 %v981_v27  ;;  %v985_v6 = vmul.f32 1.442695, %v895_v15  ;;  %v987_v42 = vmul.f32 1.442695, %v896_v59 }
 0x22b   : > { %2176 = vpow2.f32 %v983_v34  ;;  %v3616_v34 = vld [vmem:[#allocation14_spill] sm:$0xff] }
 0x22c   : > { %v3195_v53 = vpop.eup %2166  ;;  %2178 = vpow2.f32 %v985_v6  ;;  %1089 = vadd.xlane.f32.xlu1 %v1088_v21 }
 0x22d   : > { %v3197_v30 = vpop.eup %2168  ;;  %2180 = vpow2.f32 %v987_v42  ;;  %v817_v3 = vpop.xlane.xlu0 %816 }
 0x22e   : > { %v3199_v8 = vpop.eup %2170  ;;  %v897_v40 = vsub.f32 %v2892_v14, %v817_v3  ;;  %v898_v17 = vsub.f32 %v2901_v25, %v817_v3  ;;  %v1091_v23 = vadd.f32 %v3197_v30, %v3195_v53 }
 0x22f   : > { %v3205_v7 = vpop.eup %2172  ;;  %v820_v55 = vpop.xlane.xlu1 %819 }
 0x230   : > { %v989_v5 = vmul.f32 1.442695, %v897_v40  ;;  %v991_v51 = vmul.f32 1.442695, %v898_v17  ;;  %v899_v48 = vsub.f32 %v2896_v19, %v820_v55  ;;  %v900_v39 = vsub.f32 %v2907_v28, %v820_v55  ;;  %1092 = vadd.xlane.f32.xlu0 %v1091_v23  ;;  %v3615_v19 = vld [vmem:[#allocation12_spill] sm:$0xff]  ;;  %v3617_v40 = vld [vmem:[#allocation13_spill] sm:$0xff] }
 0x231   : > { %v1094_v58 = vadd.f32 %v3205_v7, %v3199_v8  ;;  %v3618_v23 = vld [vmem:[#allocation15_spill] sm:$0xff] }
 0x232   : > { %2182 = vpow2.f32 %v989_v5  ;;  %v993_v14 = vmul.f32 1.442695, %v899_v48  ;;  %v995_v45 = vmul.f32 1.442695, %v900_v39 }
 0x233   : > { %2184 = vpow2.f32 %v991_v51  ;;  %1095 = vadd.xlane.f32.xlu1 %v1094_v58 }
 0x234   : > { %v3211_v25 = vpop.eup %2174  ;;  %2186 = vpow2.f32 %v993_v14 }
 0x235   : > { %v3213_v63 = vpop.eup %2176  ;;  %2188 = vpow2.f32 %v995_v45  ;;  %v823_v33 = vpop.xlane.xlu0 %822 }
 0x236   : > { %v3215_v27 = vpop.eup %2178  ;;  %v901_v28 = vsub.f32 %v3615_v19, %v823_v33  ;;  %v902_v15 = vsub.f32 %v3616_v34, %v823_v33  ;;  %v1097_v59 = vadd.f32 %v3213_v63, %v3211_v25  ;;  %v3621_v33 = vld [vmem:[#allocation16_spill] sm:$0xff] }
 0x237   : > { %v3221_v6 = vpop.eup %2180  ;;  %v826_v42 = vpop.xlane.xlu1 %825 }
 0x238   : > { %v997_v21 = vmul.f32 1.442695, %v901_v28  ;;  %v999_v3 = vmul.f32 1.442695, %v902_v15  ;;  %v903_v17 = vsub.f32 %v3617_v40, %v826_v42  ;;  %v904_v55 = vsub.f32 %v3618_v23, %v826_v42  ;;  %1098 = vadd.xlane.f32.xlu0 %v1097_v59  ;;  %v3622_v28 = vld [vmem:[#allocation18_spill] sm:$0xff]  ;;  %v3624_v40 = vld [vmem:[#allocation17_spill] sm:$0xff] }
 0x239   : > { %v1100_v5 = vadd.f32 %v3221_v6, %v3215_v27  ;;  %v3625_v23 = vld [vmem:[#allocation19_spill] sm:$0xff] }
 0x23a   : > { %2190 = vpow2.f32 %v997_v21  ;;  %v1001_v51 = vmul.f32 1.442695, %v903_v17  ;;  %v1003_v48 = vmul.f32 1.442695, %v904_v55 }
 0x23b   : > { %2192 = vpow2.f32 %v999_v3  ;;  %1101 = vadd.xlane.f32.xlu1 %v1100_v5 }
 0x23c   : > { %v3227_v39 = vpop.eup %2182  ;;  %2194 = vpow2.f32 %v1001_v51 }
 0x23d   : > { %3619 = vst [vmem:[#allocation12_spill] sm:$0xff] %v3227_v39  ;;  %v3229_v58 = vpop.eup %2184  ;;  %2196 = vpow2.f32 %v1003_v48  ;;  %v829_v14 = vpop.xlane.xlu0 %828 }
 0x23e   : > { %v3231_v45 = vpop.eup %2186  ;;  %v905_v19 = vsub.f32 %v3621_v33, %v829_v14  ;;  %v906_v34 = vsub.f32 %v3622_v28, %v829_v14  ;;  %v1103_v15 = vadd.f32 %v3229_v58, %v3227_v39  ;;  %v3633_v39 = vld [vmem:[#allocation23_spill] sm:$0xff] }
 0x23f   : > { %3620 = vst [vmem:[#allocation14_spill] sm:$0xff] %v3231_v45  ;;  %v3237_v59 = vpop.eup %2188  ;;  %v832_v42 = vpop.xlane.xlu1 %831 }
 0x240   : > { %3623 = vst [vmem:[#allocation13_spill] sm:$0xff] %v3237_v59  ;;  %v1005_v21 = vmul.f32 1.442695, %v905_v19  ;;  %v1007_v3 = vmul.f32 1.442695, %v906_v34  ;;  %v907_v17 = vsub.f32 %v3624_v40, %v832_v42  ;;  %v908_v55 = vsub.f32 %v3625_v23, %v832_v42  ;;  %1104 = vadd.xlane.f32.xlu0 %v1103_v15  ;;  %v3629_v34 = vld [vmem:[#allocation20_spill] sm:$0xff] }
 0x241   : > { %v1106_v5 = vadd.f32 %v3237_v59, %v3231_v45  ;;  %v3630_v15 = vld [vmem:[#allocation22_spill] sm:$0xff] }
 0x242   : > { %2198 = vpow2.f32 %v1005_v21  ;;  %v1009_v51 = vmul.f32 1.442695, %v907_v17  ;;  %v1011_v48 = vmul.f32 1.442695, %v908_v55 }
 0x243   : > { %2200 = vpow2.f32 %v1007_v3  ;;  %1107 = vadd.xlane.f32.xlu1 %v1106_v5  ;;  %v3632_v5 = vld [vmem:[#allocation21_spill] sm:$0xff] }
 0x244   : > { %v3243_v14 = vpop.eup %2190  ;;  %2202 = vpow2.f32 %v1009_v51 }
 0x245   : > { %3626 = vst [vmem:[#allocation15_spill] sm:$0xff] %v3243_v14  ;;  %v3245_v33 = vpop.eup %2192  ;;  %2204 = vpow2.f32 %v1011_v48  ;;  %v835_v19 = vpop.xlane.xlu0 %834 }
 0x246   : > { %3627 = vst [vmem:[#allocation16_spill] sm:$0xff] %v3245_v33  ;;  %v3247_v28 = vpop.eup %2194  ;;  %v909_v42 = vsub.f32 %v3629_v34, %v835_v19  ;;  %v910_v40 = vsub.f32 %v3630_v15, %v835_v19  ;;  %v1109_v21 = vadd.f32 %v3245_v33, %v3243_v14  ;;  %v3636_v14 = vld [vmem:[#allocation25_spill] sm:$0xff] }
 0x247   : > { %3628 = vst [vmem:[#allocation18_spill] sm:$0xff] %v3247_v28  ;;  %v3253_v17 = vpop.eup %2196  ;;  %v838_v3 = vpop.xlane.xlu1 %837 }
 0x248   : > { %3631 = vst [vmem:[#allocation17_spill] sm:$0xff] %v3253_v17  ;;  %v1013_v23 = vmul.f32 1.442695, %v909_v42  ;;  %v1015_v55 = vmul.f32 1.442695, %v910_v40  ;;  %v911_v51 = vsub.f32 %v3632_v5, %v838_v3  ;;  %v912_v45 = vsub.f32 %v3633_v39, %v838_v3  ;;  %1110 = vadd.xlane.f32.xlu0 %v1109_v21  ;;  %v3634_v5 = vld [vmem:[#allocation24_spill] sm:$0xff] }
 0x249   : > { %v1112_v48 = vadd.f32 %v3253_v17, %v3247_v28  ;;  %v3635_v21 = vld [vmem:[#allocation26_spill] sm:$0xff]  ;;  %v3637_v28 = vld [vmem:[#allocation27_spill] sm:$0xff] }
 0x24a   : > { %2206 = vpow2.f32 %v1013_v23  ;;  %v1017_v34 = vmul.f32 1.442695, %v911_v51  ;;  %v1019_v59 = vmul.f32 1.442695, %v912_v45 }
 0x24b   : > { %2208 = vpow2.f32 %v1015_v55  ;;  %1113 = vadd.xlane.f32.xlu1 %v1112_v48 }
 0x24c   : > { %v3259_v19 = vpop.eup %2198  ;;  %2210 = vpow2.f32 %v1017_v34 }
 0x24d   : > { %v3261_v15 = vpop.eup %2200  ;;  %2212 = vpow2.f32 %v1019_v59  ;;  %v841_v42 = vpop.xlane.xlu0 %840 }
 0x24e   : > { %v3263_v40 = vpop.eup %2202  ;;  %v913_v39 = vsub.f32 %v3634_v5, %v841_v42  ;;  %v914_v3 = vsub.f32 %v3635_v21, %v841_v42  ;;  %v1115_v23 = vadd.f32 %v3261_v15, %v3259_v19 }
 0x24f   : > { %v3269_v51 = vpop.eup %2204  ;;  %v844_v45 = vpop.xlane.xlu1 %843 }
 0x250   : > { %v1021_v55 = vmul.f32 1.442695, %v913_v39  ;;  %v1023_v48 = vmul.f32 1.442695, %v914_v3  ;;  %v915_v34 = vsub.f32 %v3636_v14, %v844_v45  ;;  %v916_v17 = vsub.f32 %v3637_v28, %v844_v45  ;;  %1116 = vadd.xlane.f32.xlu0 %v1115_v23 }
 0x251   : > { %v1118_v59 = vadd.f32 %v3269_v51, %v3263_v40 }
 0x252   : > { %2214 = vpow2.f32 %v1021_v55  ;;  %v1025_v5 = vmul.f32 1.442695, %v915_v34  ;;  %v1027_v33 = vmul.f32 1.442695, %v916_v17 }
 0x253   : > { %2216 = vpow2.f32 %v1023_v48  ;;  %1119 = vadd.xlane.f32.xlu1 %v1118_v59 }
 0x254   : > { %v3275_v42 = vpop.eup %2206  ;;  %2218 = vpow2.f32 %v1025_v5 }
 0x255   : > { %3638 = vst [vmem:[#allocation19_spill] sm:$0xff] %v3275_v42  ;;  %v3277_v21 = vpop.eup %2208  ;;  %2220 = vpow2.f32 %v1027_v33 }
 0x256   : > { %v3279_v39 = vpop.eup %2210  ;;  %v1121_v14 = vadd.f32 %v3277_v21, %v3275_v42 }
 0x257   : > { %3639 = vst [vmem:[#allocation20_spill] sm:$0xff] %v3279_v39  ;;  %v3283_v28 = vpop.eup %2212 }
 0x258   : > { %3640 = vst [vmem:[#allocation22_spill] sm:$0xff] %v3283_v28  ;;  %1122 = vadd.xlane.f32.xlu0 %v1121_v14  ;;  %v1124_v3 = vadd.f32 %v3283_v28, %v3279_v39 }
 0x25a   : > { %1125 = vadd.xlane.f32.xlu1 %v1124_v3 }
 0x25c   : > { %v3287_v17 = vpop.eup %2214 }
 0x25d   : > { %3641 = vst [vmem:[#allocation21_spill] sm:$0xff] %v3287_v17  ;;  %v3289_v23 = vpop.eup %2216 }
 0x25e   : > { %3642 = vst [vmem:[#allocation23_spill] sm:$0xff] %v3289_v23  ;;  %v3291_v45 = vpop.eup %2218  ;;  %v1127_v33 = vadd.f32 %v3289_v23, %v3287_v17 }
 0x25f   : > { %3643 = vst [vmem:[#allocation24_spill] sm:$0xff] %v3291_v45  ;;  %v3295_v55 = vpop.eup %2220 }
 0x260   : > { %3644 = vst [vmem:[#allocation26_spill] sm:$0xff] %v3295_v55  ;;  %1128 = vadd.xlane.f32.xlu0 %v1127_v33  ;;  %v1130_v48 = vadd.f32 %v3295_v55, %v3291_v45 }
 0x262   : > { %1131 = vadd.xlane.f32.xlu1 %v1130_v48 }
 0x295   : > { %v1063_v34 = vpop.xlane.xlu0 %1062 }
 0x296   : > { %2222 = vrcp.f32 %v1063_v34 }
 0x299   : > { %v1066_v59 = vpop.xlane.xlu1 %1065  ;;  %v847_v5 = vpop.xlane.xlu0 %846 }
 0x29a   : > { %2224 = vrcp.f32 %v1066_v59  ;;  %v917_v14 = vsub.f32 %v3025_v32, %v847_v5  ;;  %v918_v3 = vsub.f32 %v3031_v61, %v847_v5 }
 0x29c   : > { %v1029_v42 = vmul.f32 1.442695, %v917_v14  ;;  %v1031_v39 = vmul.f32 1.442695, %v918_v3 }
 0x29d   : > { %v850_v28 = vpop.xlane.xlu1 %849  ;;  %v1069_v17 = vpop.xlane.xlu0 %1068 }
 0x29e   : > { %2226 = vpow2.f32 %v1029_v42  ;;  %v919_v33 = vsub.f32 %v3051_v43, %v850_v28  ;;  %v920_v23 = vsub.f32 %v3061_v10, %v850_v28 }
 0x29f   : > { %2228 = vpow2.f32 %v1031_v39 }
 0x2a0   : > { %v1033_v48 = vmul.f32 1.442695, %v919_v33  ;;  %v1035_v45 = vmul.f32 1.442695, %v920_v23  ;;  %2230 = vrcp.f32 %v1069_v17  ;;  %v2223_v59 = vpop.eup %2222 }
 0x2a1   : > { %v1072_v34 = vpop.xlane.xlu1 %1071  ;;  %v853_v55 = vpop.xlane.xlu0 %852  ;;  %v1190_v10 = vmul.f32 %v2223_v59, %v3033_v50  ;;  %v1189_v28 = vmul.f32 %v2223_v59, %v3027_v38 }
 0x2a2   : > { %2232 = vpow2.f32 %v1033_v48  ;;  %v921_v32 = vsub.f32 %v3057_v4, %v853_v55  ;;  %v922_v61 = vsub.f32 %v3067_v35, %v853_v55 }
 0x2a3   : > { %2234 = vpow2.f32 %v1035_v45 }
 0x2a4   : > { %v2225_v5 = vpop.eup %2224  ;;  %2236 = vrcp.f32 %v1072_v34  ;;  %v1037_v42 = vmul.f32 1.442695, %v921_v32  ;;  %v1039_v14 = vmul.f32 1.442695, %v922_v61 }
 0x2a5   : > { %v856_v43 = vpop.xlane.xlu1 %855  ;;  %v1075_v3 = vpop.xlane.xlu0 %1074  ;;  %v1192_v39 = vmul.f32 %v2225_v5, %v3047_v46  ;;  %v1191_v17 = vmul.f32 %v2225_v5, %v3043_v37 }
 0x2a6   : > { %2238 = vpow2.f32 %v1037_v42  ;;  %v923_v4 = vsub.f32 %v3091_v62, %v856_v43  ;;  %v924_v35 = vsub.f32 %v3101_v24, %v856_v43 }
 0x2a7   : > { %2240 = vpow2.f32 %v1039_v14  ;;  %v1254_v23 = vpack.c.bf16 %v1192_v39, %v1190_v10  ;;  %v1253_v45 = vpack.c.bf16 %v1191_v17, %v1189_v28 }
 0x2a8   : > { %v3311_v55 = vpop.eup %2226  ;;  %v1041_v33 = vmul.f32 1.442695, %v923_v4  ;;  %v1043_v48 = vmul.f32 1.442695, %v924_v35  ;;  %2242 = vrcp.f32 %v1075_v3 }
 0x2a9   : > { %v3313_v50 = vpop.eup %2228  ;;  %v1078_v46 = vpop.xlane.xlu1 %1077  ;;  %1452 = vmatprep.mubr.bf16.mxu1 %v1254_v23 }
 0x2aa   : > { %v859_v38 = vpop.xlane.xlu0 %858  ;;  %v2231_v34 = vpop.eup %2230  ;;  %2244 = vpow2.f32 %v1041_v33  ;;  %1453 = vmatmul.mubr.bf16.vlgmr.msra.gmra.mrb[0].mxu1 %v1253_v45  ;;  %v1133_v24 = vadd.f32 %v3313_v50, %v3311_v55 }
 0x2ab   : > { %v925_v37 = vsub.f32 %v3097_v22, %v859_v38  ;;  %v926_v62 = vsub.f32 %v3107_v60, %v859_v38  ;;  %2246 = vpow2.f32 %v1043_v48  ;;  %v1194_v43 = vmul.f32 %v2231_v34, %v3069_v52 }
 0x2ac   : > { %v3319_v59 = vpop.eup %2232  ;;  %2248 = vrcp.f32 %v1078_v46  ;;  %1134 = vadd.xlane.f32.xlu0 %v1133_v24  ;;  %v1193_v28 = vmul.f32 %v2231_v34, %v3063_v12 }
 0x2ad   : > { %v1045_v32 = vmul.f32 1.442695, %v925_v37  ;;  %v1047_v61 = vmul.f32 1.442695, %v926_v62  ;;  %v3321_v5 = vpop.eup %2234  ;;  %v862_v42 = vpop.xlane.xlu1 %861 }
 0x2ae   : > { %v1081_v14 = vpop.xlane.xlu0 %1080  ;;  %v2237_v22 = vpop.eup %2236  ;;  %v927_v60 = vsub.f32 %v3131_v56, %v862_v42  ;;  %v928_v3 = vsub.f32 %v3141_v36, %v862_v42  ;;  %v1136_v10 = vadd.f32 %v3321_v5, %v3319_v59 }
 0x2af   : > { %2250 = vpow2.f32 %v1045_v32  ;;  %v1196_v39 = vmul.f32 %v2237_v22, %v3087_v16  ;;  %v1195_v17 = vmul.f32 %v2237_v22, %v3083_v44 }
 0x2b0   : > { %2252 = vpow2.f32 %v1047_v61  ;;  %v3331_v4 = vpop.eup %2238  ;;  %v1049_v35 = vmul.f32 1.442695, %v927_v60  ;;  %v1051_v52 = vmul.f32 1.442695, %v928_v3  ;;  %1137 = vadd.xlane.f32.xlu1 %v1136_v10 }
 0x2b1   : > { %v3333_v23 = vpop.eup %2240  ;;  %2254 = vrcp.f32 %v1081_v14  ;;  %v1084_v56 = vpop.xlane.xlu1 %1083  ;;  %v1256_v36 = vpack.c.bf16 %v1196_v39, %v1194_v43  ;;  %v1255_v33 = vpack.c.bf16 %v1195_v17, %v1193_v28 }
 0x2b2   : > { %v865_v45 = vpop.xlane.xlu0 %864  ;;  %v2243_v48 = vpop.eup %2242  ;;  %2256 = vpow2.f32 %v1049_v35  ;;  %v1139_v44 = vadd.f32 %v3333_v23, %v3331_v4 }
 0x2b3   : > { %v929_v16 = vsub.f32 %v3137_v31, %v865_v45  ;;  %v930_v12 = vsub.f32 %v3147_v49, %v865_v45  ;;  %2258 = vpow2.f32 %v1051_v52  ;;  %1460 = vmatprep.mubr.bf16.mxu1 %v1256_v36  ;;  %v1198_v24 = vmul.f32 %v2243_v48, %v3109_v54 }
 0x2b4   : > { %v3339_v46 = vpop.eup %2244  ;;  %2260 = vrcp.f32 %v1084_v56  ;;  %1461 = vmatmul.mubr.bf16.gmra.mrb[4].mxu1 %v1255_v33  ;;  %1140 = vadd.xlane.f32.xlu0 %v1139_v44  ;;  %v1197_v43 = vmul.f32 %v2243_v48, %v3103_v9 }
 0x2b5   : > { %v1053_v38 = vmul.f32 1.442695, %v929_v16  ;;  %v1055_v34 = vmul.f32 1.442695, %v930_v12  ;;  %v3341_v37 = vpop.eup %2246  ;;  %v868_v62 = vpop.xlane.xlu1 %867 }
 0x2b6   : > { %v2249_v31 = vpop.eup %2248  ;;  %v931_v49 = vsub.f32 %v3169_v18, %v868_v62  ;;  %v932_v32 = vsub.f32 %v3175_v47, %v868_v62  ;;  %v1087_v61 = vpop.xlane.xlu0 %1086  ;;  %v1142_v42 = vadd.f32 %v3341_v37, %v3339_v46 }
 0x2b7   : > { %2262 = vpow2.f32 %v1053_v38  ;;  %v1200_v14 = vmul.f32 %v2249_v31, %v3119_v0  ;;  %v1199_v22 = vmul.f32 %v2249_v31, %v3111_v1 }
 0x2b8   : > { %2264 = vpow2.f32 %v1055_v34  ;;  %v1057_v54 = vmul.f32 1.442695, %v931_v49  ;;  %v1059_v3 = vmul.f32 1.442695, %v932_v32  ;;  %1143 = vadd.xlane.f32.xlu1 %v1142_v42 }
 0x2b9   : > { %v3351_v60 = vpop.eup %2250  ;;  %2266 = vrcp.f32 %v1087_v61  ;;  %v1090_v18 = vpop.xlane.xlu1 %1089  ;;  %v1258_v47 = vpack.c.bf16 %v1200_v14, %v1198_v24  ;;  %v1257_v39 = vpack.c.bf16 %v1199_v22, %v1197_v43 }
 0x2ba   : > { %v3353_v10 = vpop.eup %2252  ;;  %2268 = vpow2.f32 %v1057_v54 }
 0x2bb   : > { %v1145_v28 = vadd.f32 %v3353_v10, %v3351_v60  ;;  %v2255_v0 = vpop.eup %2254  ;;  %2270 = vpow2.f32 %v1059_v3  ;;  %1468 = vmatprep.mubr.bf16.mxu1 %v1258_v47 }
 0x2bc   : > { %v3357_v9 = vpop.eup %2256  ;;  %2272 = vrcp.f32 %v1090_v18  ;;  %1469 = vmatmul.mubr.bf16.gmra.mrb[8].mxu1 %v1257_v39  ;;  %v1202_v56 = vmul.f32 %v2255_v0, %v3149_v57  ;;  %v1201_v45 = vmul.f32 %v2255_v0, %v3143_v13 }
 0x2bd   : > { %1146 = vadd.xlane.f32.xlu0 %v1145_v28  ;;  %v3359_v1 = vpop.eup %2258  ;;  %v1093_v17 = vpop.xlane.xlu0 %1092 }
 0x2be   : > { %v2261_v35 = vpop.eup %2260  ;;  %v1148_v52 = vadd.f32 %v3359_v1, %v3357_v9  ;;  %2274 = vrcp.f32 %v1093_v17 }
 0x2bf   : > { %v1204_v36 = vmul.f32 %v2261_v35, %v3159_v29  ;;  %v1203_v33 = vmul.f32 %v2261_v35, %v3151_v26 }
 0x2c0   : > { %1149 = vadd.xlane.f32.xlu1 %v1148_v52  ;;  %v1096_v16 = vpop.xlane.xlu1 %1095 }
 0x2c1   : > { %v3367_v48 = vpop.eup %2262  ;;  %2276 = vrcp.f32 %v1096_v16  ;;  %v1260_v44 = vpack.c.bf16 %v1204_v36, %v1202_v56  ;;  %v1259_v38 = vpack.c.bf16 %v1203_v33, %v1201_v45  ;;  %v3645_v16 = vld [vmem:[#allocation13_spill] sm:$0xff] }
 0x2c2   : > { %v3369_v12 = vpop.eup %2264 }
 0x2c3   : > { %v1151_v34 = vadd.f32 %v3369_v12, %v3367_v48  ;;  %v2267_v57 = vpop.eup %2266  ;;  %1476 = vmatprep.mubr.bf16.mxu1 %v1260_v44 }
 0x2c4   : > { %v3373_v62 = vpop.eup %2268  ;;  %1477 = vmatmul.mubr.bf16.gmra.mrb[12].mxu1 %v1259_v38  ;;  %v1206_v31 = vmul.f32 %v2267_v57, %v3179_v41  ;;  %v1205_v32 = vmul.f32 %v2267_v57, %v3177_v20  ;;  %v3646_v38 = vld [vmem:[#allocation14_spill] sm:$0xff]  ;;  %v3647_v57 = vld [vmem:[#allocation12_spill] sm:$0xff] }
 0x2c5   : > { %1152 = vadd.xlane.f32.xlu0 %v1151_v34  ;;  %v3375_v13 = vpop.eup %2270  ;;  %v1099_v26 = vpop.xlane.xlu0 %1098 }
 0x2c6   : > { %v2273_v29 = vpop.eup %2272  ;;  %v1154_v24 = vadd.f32 %v3375_v13, %v3373_v62  ;;  %2278 = vrcp.f32 %v1099_v26 }
 0x2c7   : > { %v1208_v49 = vmul.f32 %v2273_v29, %v3189_v11  ;;  %v1207_v61 = vmul.f32 %v2273_v29, %v3181_v2 }
 0x2c8   : > { %1155 = vadd.xlane.f32.xlu1 %v1154_v24  ;;  %v1102_v42 = vpop.xlane.xlu1 %1101  ;;  %v2275_v14 = vpop.eup %2274 }
 0x2c9   : > { %2280 = vrcp.f32 %v1102_v42  ;;  %v1262_v43 = vpack.c.bf16 %v1208_v49, %v1206_v31  ;;  %v1261_v22 = vpack.c.bf16 %v1207_v61, %v1205_v32  ;;  %v1210_v3 = vmul.f32 %v2275_v14, %v3197_v30  ;;  %v3648_v31 = vld [vmem:[#allocation16_spill] sm:$0xff]  ;;  %v3649_v32 = vld [vmem:[#allocation17_spill] sm:$0xff] }
 0x2ca   : > { %v1209_v2 = vmul.f32 %v2275_v14, %v3195_v53  ;;  %v3650_v14 = vld [vmem:[#allocation18_spill] sm:$0xff] }
 0x2cb   : > { %v2277_v54 = vpop.eup %2276  ;;  %1484 = vmatprep.mubr.bf16.mxu1 %v1262_v43 }
 0x2cc   : > { %1485 = vmatmul.mubr.bf16.gmra.mrb[16].mxu1 %v1261_v22  ;;  %v1212_v41 = vmul.f32 %v2277_v54, %v3205_v7  ;;  %v1211_v11 = vmul.f32 %v2277_v54, %v3199_v8  ;;  %v3651_v54 = vld [vmem:[#allocation15_spill] sm:$0xff] }
 0x2cd   : > { %v1105_v18 = vpop.xlane.xlu0 %1104 }
 0x2ce   : > { %v1264_v47 = vpack.c.bf16 %v1212_v41, %v1210_v3  ;;  %2282 = vrcp.f32 %v1105_v18  ;;  %v1263_v28 = vpack.c.bf16 %v1211_v11, %v1209_v2 }
 0x2d0   : > { %v1108_v20 = vpop.xlane.xlu1 %1107  ;;  %1492 = vmatprep.mubr.bf16.mxu1 %v1264_v47  ;;  %v2279_v39 = vpop.eup %2278 }
 0x2d1   : > { %2284 = vrcp.f32 %v1108_v20  ;;  %v1214_v17 = vmul.f32 %v2279_v39, %v3213_v63  ;;  %v1213_v56 = vmul.f32 %v2279_v39, %v3211_v25 }
 0x2d3   : > { %v2281_v0 = vpop.eup %2280 }
 0x2d4   : > { %1493 = vmatmul.mubr.bf16.gmra.mrb[20].mxu1 %v1263_v28  ;;  %v1216_v30 = vmul.f32 %v2281_v0, %v3221_v6  ;;  %v1215_v52 = vmul.f32 %v2281_v0, %v3215_v27 }
 0x2d5   : > { %v1111_v35 = vpop.xlane.xlu0 %1110 }
 0x2d6   : > { %v1266_v7 = vpack.c.bf16 %v1216_v30, %v1214_v17  ;;  %2286 = vrcp.f32 %v1111_v35  ;;  %v1265_v53 = vpack.c.bf16 %v1215_v52, %v1213_v56 }
 0x2d8   : > { %v1114_v8 = vpop.xlane.xlu1 %1113  ;;  %1500 = vmatprep.mubr.bf16.mxu1 %v1266_v7  ;;  %v2283_v36 = vpop.eup %2282 }
 0x2d9   : > { %2288 = vrcp.f32 %v1114_v8  ;;  %v1218_v33 = vmul.f32 %v2283_v36, %v3229_v58  ;;  %v1217_v26 = vmul.f32 %v2283_v36, %v3647_v57  ;;  %v3652_v8 = vld [vmem:[#allocation22_spill] sm:$0xff] }
 0x2db   : > { %v2285_v45 = vpop.eup %2284 }
 0x2dc   : > { %1501 = vmatmul.mubr.bf16.gmra.mrb[24].mxu1 %v1265_v53  ;;  %v1220_v63 = vmul.f32 %v2285_v45, %v3645_v16  ;;  %v1219_v34 = vmul.f32 %v2285_v45, %v3646_v38  ;;  %v3654_v45 = vld [vmem:[#allocation19_spill] sm:$0xff] }
 0x2dd   : > { %v1117_v44 = vpop.xlane.xlu0 %1116 }
 0x2de   : > { %v1268_v6 = vpack.c.bf16 %v1220_v63, %v1218_v33  ;;  %2290 = vrcp.f32 %v1117_v44  ;;  %v1267_v25 = vpack.c.bf16 %v1219_v34, %v1217_v26  ;;  %v3655_v63 = vld [vmem:[#allocation23_spill] sm:$0xff]  ;;  %v3657_v34 = vld [vmem:[#allocation24_spill] sm:$0xff] }
 0x2e0   : > { %v1120_v27 = vpop.xlane.xlu1 %1119  ;;  %1508 = vmatprep.mubr.bf16.mxu1 %v1268_v6  ;;  %v2287_v29 = vpop.eup %2286  ;;  %v3656_v6 = vld [vmem:[#allocation26_spill] sm:$0xff] }
 0x2e1   : > { %2292 = vrcp.f32 %v1120_v27  ;;  %v1222_v49 = vmul.f32 %v2287_v29, %v3648_v31  ;;  %v1221_v3 = vmul.f32 %v2287_v29, %v3651_v54  ;;  %v3658_v27 = vld [vmem:[#allocation21_spill] sm:$0xff] }
 0x2e3   : > { %v2289_v24 = vpop.eup %2288 }
 0x2e4   : > { %1509 = vmatmul.mubr.bf16.gmra.mrb[28].mxu1 %v1267_v25  ;;  %v1224_v58 = vmul.f32 %v2289_v24, %v3649_v32  ;;  %v1223_v43 = vmul.f32 %v2289_v24, %v3650_v14 }
 0x2e5   : > { %v1123_v61 = vpop.xlane.xlu0 %1122 }
 0x2e6   : > { %2294 = vrcp.f32 %v1123_v61  ;;  %v1270_v42 = vpack.c.bf16 %v1224_v58, %v1222_v49  ;;  %v1269_v18 = vpack.c.bf16 %v1223_v43, %v1221_v3 }
 0x2e7   : > { %v1126_v22 = vpop.xlane.xlu1 %1125 }
 0x2e8   : > { %2296 = vrcp.f32 %v1126_v22  ;;  %1516 = vmatprep.mubr.bf16.mxu1 %v1270_v42  ;;  %v2291_v41 = vpop.eup %2290 }
 0x2e9   : > { %v1226_v11 = vmul.f32 %v2291_v41, %v3261_v15  ;;  %v1225_v30 = vmul.f32 %v2291_v41, %v3259_v19 }
 0x2eb   : > { %v2293_v47 = vpop.eup %2292 }
 0x2ec   : > { %1517 = vmatmul.mubr.bf16.gmra.mrb[32].mxu1 %v1269_v18  ;;  %v1228_v20 = vmul.f32 %v2293_v47, %v3269_v51  ;;  %v1227_v28 = vmul.f32 %v2293_v47, %v3263_v40  ;;  %v3653_v51 = vld [vmem:[#allocation20_spill] sm:$0xff] }
 0x2ed   : > { %v1129_v2 = vpop.xlane.xlu0 %1128 }
 0x2ee   : > { %2298 = vrcp.f32 %v1129_v2  ;;  %v1272_v39 = vpack.c.bf16 %v1228_v20, %v1226_v11  ;;  %v1271_v7 = vpack.c.bf16 %v1227_v28, %v1225_v30 }
 0x2ef   : > { %v1132_v0 = vpop.xlane.xlu1 %1131 }
 0x2f0   : > { %v2295_v17 = vpop.eup %2294  ;;  %2300 = vrcp.f32 %v1132_v0  ;;  %1524 = vmatprep.mubr.bf16.mxu1 %v1272_v39 }
 0x2f1   : > { %v1230_v52 = vmul.f32 %v2295_v17, %v3277_v21  ;;  %v1229_v40 = vmul.f32 %v2295_v17, %v3654_v45 }
 0x2f2   : > { %v2297_v35 = vpop.eup %2296 }
 0x2f3   : > { %v1232_v56 = vmul.f32 %v2297_v35, %v3652_v8  ;;  %v1231_v36 = vmul.f32 %v2297_v35, %v3653_v51 }
 0x2f4   : > { %1525 = vmatmul.mubr.bf16.gmra.mrb[36].mxu1 %v1271_v7 }
 0x2f5   : > { %v1274_v15 = vpack.c.bf16 %v1232_v56, %v1230_v52  ;;  %v1273_v16 = vpack.c.bf16 %v1231_v36, %v1229_v40 }
 0x2f7   : > { %1532 = vmatprep.mubr.bf16.mxu1 %v1274_v15 }
 0x2f8   : > { %v2299_v53 = vpop.eup %2298 }
 0x2f9   : > { %v1234_v44 = vmul.f32 %v2299_v53, %v3655_v63  ;;  %v1233_v57 = vmul.f32 %v2299_v53, %v3658_v27 }
 0x2fa   : > { %v2301_v33 = vpop.eup %2300 }
 0x2fb   : > { %v1236_v19 = vmul.f32 %v2301_v33, %v3656_v6  ;;  %v1235_v21 = vmul.f32 %v2301_v33, %v3657_v34 }
 0x2fc   : > { %1533 = vmatmul.mubr.bf16.gmra.mrb[40].mxu1 %v1273_v16 }
 0x2fd   : > { %v1276_v38 = vpack.c.bf16 %v1236_v19, %v1234_v44  ;;  %v1275_v26 = vpack.c.bf16 %v1235_v21, %v1233_v57 }
 0x2ff   : > { %1540 = vmatprep.mubr.bf16.mxu1 %v1276_v38 }
 0x304   : > { %1541 = vmatmul.mubr.bf16.gmra.mrb[44].mxu1 %v1275_v26 }
 0x339   : > { %v1135_v29 = vpop.xlane.xlu0 %1134 }
 0x33a   : > { %2302 = vrcp.f32 %v1135_v29 }
 0x33d   : > { %v1138_v25 = vpop.xlane.xlu1 %1137 }
 0x33e   : > { %2304 = vrcp.f32 %v1138_v25 }
 0x341   : > { %v1141_v24 = vpop.xlane.xlu0 %1140 }
 0x342   : > { %2306 = vrcp.f32 %v1141_v24 }
 0x344   : > { %v2303_v49 = vpop.eup %2302 }
 0x345   : > { %v1144_v31 = vpop.xlane.xlu1 %1143  ;;  %v1238_v61 = vmul.f32 %v2303_v49, %v3313_v50  ;;  %v1237_v14 = vmul.f32 %v2303_v49, %v3311_v55 }
 0x346   : > { %2308 = vrcp.f32 %v1144_v31 }
 0x348   : > { %v2305_v32 = vpop.eup %2304 }
 0x349   : > { %v1240_v42 = vmul.f32 %v2305_v32, %v3321_v5  ;;  %v1239_v43 = vmul.f32 %v2305_v32, %v3319_v59 }
 0x34a   : > { %v1147_v58 = vpop.xlane.xlu0 %1146 }
 0x34b   : > { %v1278_v22 = vpack.c.bf16 %v1240_v42, %v1238_v61  ;;  %v1277_v54 = vpack.c.bf16 %v1239_v43, %v1237_v14  ;;  %2310 = vrcp.f32 %v1147_v58 }
 0x34c   : > { %v2307_v41 = vpop.eup %2306 }
 0x34d   : > { %v1150_v3 = vpop.xlane.xlu1 %1149  ;;  %1548 = vmatprep.mubr.bf16.mxu1 %v1278_v22  ;;  %v1242_v11 = vmul.f32 %v2307_v41, %v3333_v23  ;;  %v1241_v5 = vmul.f32 %v2307_v41, %v3331_v4 }
 0x34e   : > { %2312 = vrcp.f32 %v1150_v3  ;;  %1549 = vmatmul.mubr.bf16.gmra.mrb[48].mxu1 %v1277_v54 }
 0x350   : > { %v2309_v18 = vpop.eup %2308 }
 0x351   : > { %v1244_v50 = vmul.f32 %v2309_v18, %v3341_v37  ;;  %v1243_v55 = vmul.f32 %v2309_v18, %v3339_v46 }
 0x352   : > { %v1153_v47 = vpop.xlane.xlu0 %1152 }
 0x353   : > { %v1280_v20 = vpack.c.bf16 %v1244_v50, %v1242_v11  ;;  %v1279_v59 = vpack.c.bf16 %v1243_v55, %v1241_v5  ;;  %2314 = vrcp.f32 %v1153_v47 }
 0x355   : > { %v1156_v2 = vpop.xlane.xlu1 %1155  ;;  %1556 = vmatprep.mubr.bf16.mxu1 %v1280_v20  ;;  %v2311_v39 = vpop.eup %2310 }
 0x356   : > { %2316 = vrcp.f32 %v1156_v2  ;;  %1557 = vmatmul.mubr.bf16.gmra.mrb[52].mxu1 %v1279_v59  ;;  %v1246_v0 = vmul.f32 %v2311_v39, %v3353_v10  ;;  %v1245_v23 = vmul.f32 %v2311_v39, %v3351_v60 }
 0x358   : > { %v2313_v28 = vpop.eup %2312 }
 0x359   : > { %v1248_v17 = vmul.f32 %v2313_v28, %v3359_v1  ;;  %v1247_v37 = vmul.f32 %v2313_v28, %v3357_v9  ;;  %v3430_v9 = vld [vmem:[%s3554_s4] ss:$0 sm:$0xff] }
 0x35b   : > { %v1282_v4 = vpack.c.bf16 %v1248_v17, %v1246_v0  ;;  %v1281_v30 = vpack.c.bf16 %v1247_v37, %v1245_v23 }
 0x35d   : > { %1564 = vmatprep.mubr.bf16.mxu1 %v1282_v4  ;;  %v2315_v46 = vpop.eup %2314 }
 0x35e   : > { %1565 = vmatmul.mubr.bf16.gmra.mrb[56].mxu1 %v1281_v30  ;;  %v1250_v7 = vmul.f32 %v2315_v46, %v3369_v12  ;;  %v1249_v8 = vmul.f32 %v2315_v46, %v3367_v48 }
 0x360   : > { %v2317_v35 = vpop.eup %2316 }
 0x361   : > { %v1252_v52 = vmul.f32 %v2317_v35, %v3375_v13  ;;  %v1251_v10 = vmul.f32 %v2317_v35, %v3373_v62 }
 0x363   : > { %v1284_v1 = vpack.c.bf16 %v1252_v52, %v1250_v7  ;;  %v1283_v56 = vpack.c.bf16 %v1251_v10, %v1249_v8 }
 0x365   : > { %1572 = vmatprep.mubr.bf16.mxu1 %v1284_v1 }
 0x366   : > { %1573 = vmatmul.mubr.bf16.gmra.mrb[60].mxu1 %v1283_v56 }
 0x37d   : > { %v1900_v60 = vpop.f32.mrb[0].mxu1 }
 0x37e   : > { %v1901_v15 = vpop.f32.mrb[1].mxu1 }
 0x37f   : > { %v1902_v51 = vadd.f32 %v1901_v15, %v1900_v60  ;;  %v1903_v36 = vpop.f32.mrb[2].mxu1 }
 0x380   : > { %v1904_v12 = vpop.f32.mrb[3].mxu1 }
 0x381   : > { %v1455_v13 = vadd.f32 %v1902_v51, %v3430_v9  ;;  %v1905_v48 = vadd.f32 %v1904_v12, %v1903_v36 }
 0x383   : > { %vm1581_vm1 = vcmp.gt.f32.partialorder %v1455_v13, 0.0  ;;  %v1613_v62 = vmul.f32 0.01, %v1455_v13  ;;  %v1458_v53 = vadd.f32 %v1905_v48, %v3430_v9 }
 0x385   : > { %v1645_v45 = vsel %vm1581_vm1, %v1455_v13, %v1613_v62  ;;  %vm1582_vm2 = vcmp.gt.f32.partialorder %v1458_v53, 0.0  ;;  %v1614_v40 = vmul.f32 0.01, %v1458_v53 }
 0x386   : > { %1677 = vst [vmem:[%s3435_s28] sm:$0xff] %v1645_v45 }
 0x387   : > { %v1646_v33 = vsel %vm1582_vm2, %v1458_v53, %v1614_v40  ;;  %v1906_v16 = vpop.f32.mrb[4].mxu1 }
 0x388   : > { %1678 = vst [vmem:[%s3435_s28 + $0x8] sm:$0xff] %v1646_v33  ;;  %v1907_v63 = vpop.f32.mrb[5].mxu1 }
 0x389   : > { %v1908_v44 = vadd.f32 %v1907_v63, %v1906_v16  ;;  %v1909_v6 = vpop.f32.mrb[6].mxu1 }
 0x38a   : > { %v1910_v19 = vpop.f32.mrb[7].mxu1 }
 0x38b   : > { %v1463_v38 = vadd.f32 %v1908_v44, %v3430_v9  ;;  %v1911_v34 = vadd.f32 %v1910_v19, %v1909_v6 }
 0x38d   : > { %vm1583_vm3 = vcmp.gt.f32.partialorder %v1463_v38, 0.0  ;;  %v1615_v21 = vmul.f32 0.01, %v1463_v38  ;;  %v1466_v27 = vadd.f32 %v1911_v34, %v3430_v9 }
 0x38f   : > { %v1647_v57 = vsel %vm1583_vm3, %v1463_v38, %v1615_v21  ;;  %vm1584_vm4 = vcmp.gt.f32.partialorder %v1466_v27, 0.0  ;;  %v1616_v26 = vmul.f32 0.01, %v1466_v27  ;;  %v1912_v29 = vpop.f32.mrb[8].mxu1 }
 0x390   : > { %1679 = vst [vmem:[%s3435_s28 + $0x10] sm:$0xff] %v1647_v57  ;;  %v1913_v25 = vpop.f32.mrb[9].mxu1 }
 0x391   : > { %v1648_v24 = vsel %vm1584_vm4, %v1466_v27, %v1616_v26  ;;  %v1914_v31 = vadd.f32 %v1913_v25, %v1912_v29  ;;  %v1915_v49 = vpop.f32.mrb[10].mxu1 }
 0x392   : > { %1680 = vst [vmem:[%s3435_s28 + $0x18] sm:$0xff] %v1648_v24  ;;  %v1916_v32 = vpop.f32.mrb[11].mxu1 }
 0x393   : > { %v1471_v58 = vadd.f32 %v1914_v31, %v3430_v9  ;;  %v1917_v61 = vadd.f32 %v1916_v32, %v1915_v49 }
 0x395   : > { %vm1585_vm5 = vcmp.gt.f32.partialorder %v1471_v58, 0.0  ;;  %v1617_v42 = vmul.f32 0.01, %v1471_v58  ;;  %v1474_v14 = vadd.f32 %v1917_v61, %v3430_v9 }
 0x397   : > { %v1649_v43 = vsel %vm1585_vm5, %v1471_v58, %v1617_v42  ;;  %vm1586_vm6 = vcmp.gt.f32.partialorder %v1474_v14, 0.0  ;;  %v1618_v22 = vmul.f32 0.01, %v1474_v14  ;;  %v1918_v54 = vpop.f32.mrb[12].mxu1 }
 0x398   : > { %1681 = vst [vmem:[%s3435_s28 + $0x20] sm:$0xff] %v1649_v43  ;;  %v1919_v3 = vpop.f32.mrb[13].mxu1 }
 0x399   : > { %v1650_v41 = vsel %vm1586_vm6, %v1474_v14, %v1618_v22  ;;  %v1920_v18 = vadd.f32 %v1919_v3, %v1918_v54  ;;  %v1921_v47 = vpop.f32.mrb[14].mxu1 }
 0x39a   : > { %1682 = vst [vmem:[%s3435_s28 + $0x28] sm:$0xff] %v1650_v41  ;;  %v1922_v11 = vpop.f32.mrb[15].mxu1 }
 0x39b   : > { %v1479_v50 = vadd.f32 %v1920_v18, %v3430_v9  ;;  %v1923_v5 = vadd.f32 %v1922_v11, %v1921_v47 }
 0x39d   : > { %vm1587_vm7 = vcmp.gt.f32.partialorder %v1479_v50, 0.0  ;;  %v1619_v55 = vmul.f32 0.01, %v1479_v50  ;;  %v1482_v20 = vadd.f32 %v1923_v5, %v3430_v9 }
 0x39f   : > { %v1651_v59 = vsel %vm1587_vm7, %v1479_v50, %v1619_v55  ;;  %vm1588_vm8 = vcmp.gt.f32.partialorder %v1482_v20, 0.0  ;;  %v1620_v2 = vmul.f32 0.01, %v1482_v20  ;;  %v1924_v39 = vpop.f32.mrb[16].mxu1 }
 0x3a0   : > { %1683 = vst [vmem:[%s3435_s28 + $0x30] sm:$0xff] %v1651_v59  ;;  %v1925_v28 = vpop.f32.mrb[17].mxu1 }
 0x3a1   : > { %v1652_v0 = vsel %vm1588_vm8, %v1482_v20, %v1620_v2  ;;  %v1926_v17 = vadd.f32 %v1925_v28, %v1924_v39  ;;  %v1927_v23 = vpop.f32.mrb[18].mxu1 }
 0x3a2   : > { %1684 = vst [vmem:[%s3435_s28 + $0x38] sm:$0xff] %v1652_v0  ;;  %v1928_v37 = vpop.f32.mrb[19].mxu1 }
 0x3a3   : > { %v1487_v4 = vadd.f32 %v1926_v17, %v3430_v9  ;;  %v1929_v30 = vadd.f32 %v1928_v37, %v1927_v23 }
 0x3a5   : > { %vm1589_vm9 = vcmp.gt.f32.partialorder %v1487_v4, 0.0  ;;  %v1621_v46 = vmul.f32 0.01, %v1487_v4  ;;  %v1490_v35 = vadd.f32 %v1929_v30, %v3430_v9 }
 0x3a7   : > { %v1653_v7 = vsel %vm1589_vm9, %v1487_v4, %v1621_v46  ;;  %vm1590_vm10 = vcmp.gt.f32.partialorder %v1490_v35, 0.0  ;;  %v1622_v52 = vmul.f32 0.01, %v1490_v35  ;;  %v1930_v8 = vpop.f32.mrb[20].mxu1 }
 0x3a8   : > { %1685 = vst [vmem:[%s3435_s28 + $0x40] sm:$0xff] %v1653_v7  ;;  %v1931_v10 = vpop.f32.mrb[21].mxu1 }
 0x3a9   : > { %v1654_v1 = vsel %vm1590_vm10, %v1490_v35, %v1622_v52  ;;  %v1932_v56 = vadd.f32 %v1931_v10, %v1930_v8  ;;  %v1933_v60 = vpop.f32.mrb[22].mxu1 }
 0x3aa   : > { %1686 = vst [vmem:[%s3435_s28 + $0x48] sm:$0xff] %v1654_v1  ;;  %v1934_v15 = vpop.f32.mrb[23].mxu1 }
 0x3ab   : > { %v1495_v51 = vadd.f32 %v1932_v56, %v3430_v9  ;;  %v1935_v36 = vadd.f32 %v1934_v15, %v1933_v60 }
 0x3ad   : > { %vm1591_vm11 = vcmp.gt.f32.partialorder %v1495_v51, 0.0  ;;  %v1623_v12 = vmul.f32 0.01, %v1495_v51  ;;  %v1498_v13 = vadd.f32 %v1935_v36, %v3430_v9 }
 0x3af   : > { %v1655_v48 = vsel %vm1591_vm11, %v1495_v51, %v1623_v12  ;;  %vm1592_vm12 = vcmp.gt.f32.partialorder %v1498_v13, 0.0  ;;  %v1624_v62 = vmul.f32 0.01, %v1498_v13  ;;  %v1936_v53 = vpop.f32.mrb[24].mxu1 }
 0x3b0   : > { %1687 = vst [vmem:[%s3435_s28 + $0x50] sm:$0xff] %v1655_v48  ;;  %v1937_v45 = vpop.f32.mrb[25].mxu1 }
 0x3b1   : > { %v1656_v40 = vsel %vm1592_vm12, %v1498_v13, %v1624_v62  ;;  %v1938_v33 = vadd.f32 %v1937_v45, %v1936_v53  ;;  %v1939_v16 = vpop.f32.mrb[26].mxu1 }
 0x3b2   : > { %1688 = vst [vmem:[%s3435_s28 + $0x58] sm:$0xff] %v1656_v40  ;;  %v1940_v63 = vpop.f32.mrb[27].mxu1 }
 0x3b3   : > { %v1503_v44 = vadd.f32 %v1938_v33, %v3430_v9  ;;  %v1941_v6 = vadd.f32 %v1940_v63, %v1939_v16 }
 0x3b5   : > { %vm1593_vm13 = vcmp.gt.f32.partialorder %v1503_v44, 0.0  ;;  %v1625_v19 = vmul.f32 0.01, %v1503_v44  ;;  %v1506_v38 = vadd.f32 %v1941_v6, %v3430_v9 }
 0x3b7   : > { %v1657_v34 = vsel %vm1593_vm13, %v1503_v44, %v1625_v19  ;;  %vm1594_vm14 = vcmp.gt.f32.partialorder %v1506_v38, 0.0  ;;  %v1626_v21 = vmul.f32 0.01, %v1506_v38  ;;  %v1942_v27 = vpop.f32.mrb[28].mxu1 }
 0x3b8   : > { %1689 = vst [vmem:[%s3435_s28 + $0x60] sm:$0xff] %v1657_v34  ;;  %v1943_v57 = vpop.f32.mrb[29].mxu1 }
 0x3b9   : > { %v1658_v26 = vsel %vm1594_vm14, %v1506_v38, %v1626_v21  ;;  %v1944_v29 = vadd.f32 %v1943_v57, %v1942_v27  ;;  %v1945_v25 = vpop.f32.mrb[30].mxu1 }
 0x3ba   : > { %1690 = vst [vmem:[%s3435_s28 + $0x68] sm:$0xff] %v1658_v26  ;;  %v1946_v24 = vpop.f32.mrb[31].mxu1 }
 0x3bb   : > { %v1511_v31 = vadd.f32 %v1944_v29, %v3430_v9  ;;  %v1947_v49 = vadd.f32 %v1946_v24, %v1945_v25 }
 0x3bd   : > { %vm1595_vm15 = vcmp.gt.f32.partialorder %v1511_v31, 0.0  ;;  %v1627_v32 = vmul.f32 0.01, %v1511_v31  ;;  %v1514_v58 = vadd.f32 %v1947_v49, %v3430_v9 }
 0x3bf   : > { %v1659_v61 = vsel %vm1595_vm15, %v1511_v31, %v1627_v32  ;;  %vm1596_vm0 = vcmp.gt.f32.partialorder %v1514_v58, 0.0  ;;  %v1628_v42 = vmul.f32 0.01, %v1514_v58  ;;  %v1948_v14 = vpop.f32.mrb[32].mxu1 }
 0x3c0   : > { %1691 = vst [vmem:[%s3435_s28 + $0x70] sm:$0xff] %v1659_v61  ;;  %v1949_v43 = vpop.f32.mrb[33].mxu1 }
 0x3c1   : > { %v1660_v22 = vsel %vm1596_vm0, %v1514_v58, %v1628_v42  ;;  %v1950_v54 = vadd.f32 %v1949_v43, %v1948_v14  ;;  %v1951_v3 = vpop.f32.mrb[34].mxu1 }
 0x3c2   : > { %1692 = vst [vmem:[%s3435_s28 + $0x78] sm:$0xff] %v1660_v22  ;;  %v1952_v41 = vpop.f32.mrb[35].mxu1 }
 0x3c3   : > { %v1519_v18 = vadd.f32 %v1950_v54, %v3430_v9  ;;  %v1953_v47 = vadd.f32 %v1952_v41, %v1951_v3 }
 0x3c5   : > { %vm1597_vm1 = vcmp.gt.f32.partialorder %v1519_v18, 0.0  ;;  %v1629_v11 = vmul.f32 0.01, %v1519_v18  ;;  %v1522_v50 = vadd.f32 %v1953_v47, %v3430_v9 }
 0x3c7   : > { %v1661_v5 = vsel %vm1597_vm1, %v1519_v18, %v1629_v11  ;;  %vm1598_vm2 = vcmp.gt.f32.partialorder %v1522_v50, 0.0  ;;  %v1630_v55 = vmul.f32 0.01, %v1522_v50  ;;  %v1954_v20 = vpop.f32.mrb[36].mxu1 }
 0x3c8   : > { %1693 = vst [vmem:[%s3435_s28 + $0x80] sm:$0xff] %v1661_v5  ;;  %v1955_v59 = vpop.f32.mrb[37].mxu1 }
 0x3c9   : > { %v1662_v2 = vsel %vm1598_vm2, %v1522_v50, %v1630_v55  ;;  %v1956_v39 = vadd.f32 %v1955_v59, %v1954_v20  ;;  %v1957_v28 = vpop.f32.mrb[38].mxu1 }
 0x3ca   : > { %1694 = vst [vmem:[%s3435_s28 + $0x88] sm:$0xff] %v1662_v2  ;;  %v1958_v0 = vpop.f32.mrb[39].mxu1 }
 0x3cb   : > { %v1527_v17 = vadd.f32 %v1956_v39, %v3430_v9  ;;  %v1959_v23 = vadd.f32 %v1958_v0, %v1957_v28 }
 0x3cd   : > { %vm1599_vm3 = vcmp.gt.f32.partialorder %v1527_v17, 0.0  ;;  %v1631_v37 = vmul.f32 0.01, %v1527_v17  ;;  %v1530_v4 = vadd.f32 %v1959_v23, %v3430_v9 }
 0x3cf   : > { %v1663_v30 = vsel %vm1599_vm3, %v1527_v17, %v1631_v37  ;;  %vm1600_vm4 = vcmp.gt.f32.partialorder %v1530_v4, 0.0  ;;  %v1632_v46 = vmul.f32 0.01, %v1530_v4  ;;  %v1960_v35 = vpop.f32.mrb[40].mxu1 }
 0x3d0   : > { %1695 = vst [vmem:[%s3435_s28 + $0x90] sm:$0xff] %v1663_v30  ;;  %v1961_v7 = vpop.f32.mrb[41].mxu1 }
 0x3d1   : > { %v1664_v52 = vsel %vm1600_vm4, %v1530_v4, %v1632_v46  ;;  %v1962_v8 = vadd.f32 %v1961_v7, %v1960_v35  ;;  %v1963_v10 = vpop.f32.mrb[42].mxu1 }
 0x3d2   : > { %1696 = vst [vmem:[%s3435_s28 + $0x98] sm:$0xff] %v1664_v52  ;;  %v1964_v1 = vpop.f32.mrb[43].mxu1 }
 0x3d3   : > { %v1535_v56 = vadd.f32 %v1962_v8, %v3430_v9  ;;  %v1965_v60 = vadd.f32 %v1964_v1, %v1963_v10 }
 0x3d5   : > { %vm1601_vm5 = vcmp.gt.f32.partialorder %v1535_v56, 0.0  ;;  %v1633_v15 = vmul.f32 0.01, %v1535_v56  ;;  %v1538_v51 = vadd.f32 %v1965_v60, %v3430_v9 }
 0x3d7   : > { %v1665_v36 = vsel %vm1601_vm5, %v1535_v56, %v1633_v15  ;;  %vm1602_vm6 = vcmp.gt.f32.partialorder %v1538_v51, 0.0  ;;  %v1634_v12 = vmul.f32 0.01, %v1538_v51  ;;  %v1966_v13 = vpop.f32.mrb[44].mxu1 }
 0x3d8   : > { %1697 = vst [vmem:[%s3435_s28 + $0xa0] sm:$0xff] %v1665_v36  ;;  %v1967_v48 = vpop.f32.mrb[45].mxu1 }
 0x3d9   : > { %v1666_v62 = vsel %vm1602_vm6, %v1538_v51, %v1634_v12  ;;  %v1968_v53 = vadd.f32 %v1967_v48, %v1966_v13  ;;  %v1969_v45 = vpop.f32.mrb[46].mxu1 }
 0x3da   : > { %1698 = vst [vmem:[%s3435_s28 + $0xa8] sm:$0xff] %v1666_v62  ;;  %v1970_v40 = vpop.f32.mrb[47].mxu1 }
 0x3db   : > { %v1543_v33 = vadd.f32 %v1968_v53, %v3430_v9  ;;  %v1971_v16 = vadd.f32 %v1970_v40, %v1969_v45 }
 0x3dd   : > { %vm1603_vm7 = vcmp.gt.f32.partialorder %v1543_v33, 0.0  ;;  %v1635_v63 = vmul.f32 0.01, %v1543_v33  ;;  %v1546_v44 = vadd.f32 %v1971_v16, %v3430_v9 }
 0x3df   : > { %v1667_v6 = vsel %vm1603_vm7, %v1543_v33, %v1635_v63  ;;  %vm1604_vm8 = vcmp.gt.f32.partialorder %v1546_v44, 0.0  ;;  %v1636_v19 = vmul.f32 0.01, %v1546_v44 }
 0x3e0   : > { %1699 = vst [vmem:[%s3435_s28 + $0xb0] sm:$0xff] %v1667_v6 }
 0x3e1   : > { %v1668_v38 = vsel %vm1604_vm8, %v1546_v44, %v1636_v19 }
 0x3e2   : > { %1700 = vst [vmem:[%s3435_s28 + $0xb8] sm:$0xff] %v1668_v38 }
 0x421   : > { %v1972_v34 = vpop.f32.mrb[48].mxu1 }
 0x422   : > { %v1973_v21 = vpop.f32.mrb[49].mxu1 }
 0x423   : > { %v1974_v27 = vadd.f32 %v1973_v21, %v1972_v34  ;;  %v1975_v57 = vpop.f32.mrb[50].mxu1 }
 0x424   : > { %v1976_v26 = vpop.f32.mrb[51].mxu1 }
 0x425   : > { %v1551_v29 = vadd.f32 %v1974_v27, %v3430_v9  ;;  %v1977_v25 = vadd.f32 %v1976_v26, %v1975_v57 }
 0x427   : > { %vm1605_vm9 = vcmp.gt.f32.partialorder %v1551_v29, 0.0  ;;  %v1637_v24 = vmul.f32 0.01, %v1551_v29  ;;  %v1554_v31 = vadd.f32 %v1977_v25, %v3430_v9 }
 0x429   : > { %v1669_v49 = vsel %vm1605_vm9, %v1551_v29, %v1637_v24  ;;  %vm1606_vm10 = vcmp.gt.f32.partialorder %v1554_v31, 0.0  ;;  %v1638_v32 = vmul.f32 0.01, %v1554_v31  ;;  %v1978_v58 = vpop.f32.mrb[52].mxu1 }
 0x42a   : > { %1701 = vst [vmem:[%s3435_s28 + $0xc0] sm:$0xff] %v1669_v49  ;;  %v1979_v61 = vpop.f32.mrb[53].mxu1 }
 0x42b   : > { %v1670_v42 = vsel %vm1606_vm10, %v1554_v31, %v1638_v32  ;;  %v1980_v14 = vadd.f32 %v1979_v61, %v1978_v58  ;;  %v1981_v43 = vpop.f32.mrb[54].mxu1 }
 0x42c   : > { %1702 = vst [vmem:[%s3435_s28 + $0xc8] sm:$0xff] %v1670_v42  ;;  %v1982_v22 = vpop.f32.mrb[55].mxu1 }
 0x42d   : > { %v1559_v54 = vadd.f32 %v1980_v14, %v3430_v9  ;;  %v1983_v3 = vadd.f32 %v1982_v22, %v1981_v43 }
 0x42f   : > { %vm1607_vm11 = vcmp.gt.f32.partialorder %v1559_v54, 0.0  ;;  %v1639_v41 = vmul.f32 0.01, %v1559_v54  ;;  %v1562_v18 = vadd.f32 %v1983_v3, %v3430_v9 }
 0x431   : > { %v1671_v47 = vsel %vm1607_vm11, %v1559_v54, %v1639_v41  ;;  %vm1608_vm12 = vcmp.gt.f32.partialorder %v1562_v18, 0.0  ;;  %v1640_v11 = vmul.f32 0.01, %v1562_v18  ;;  %v1984_v50 = vpop.f32.mrb[56].mxu1 }
 0x432   : > { %1703 = vst [vmem:[%s3435_s28 + $0xd0] sm:$0xff] %v1671_v47  ;;  %v1985_v5 = vpop.f32.mrb[57].mxu1 }
 0x433   : > { %v1672_v55 = vsel %vm1608_vm12, %v1562_v18, %v1640_v11  ;;  %v1986_v20 = vadd.f32 %v1985_v5, %v1984_v50  ;;  %v1987_v59 = vpop.f32.mrb[58].mxu1 }
 0x434   : > { %1704 = vst [vmem:[%s3435_s28 + $0xd8] sm:$0xff] %v1672_v55  ;;  %v1988_v2 = vpop.f32.mrb[59].mxu1 }
 0x435   : > { %v1567_v39 = vadd.f32 %v1986_v20, %v3430_v9  ;;  %v1989_v28 = vadd.f32 %v1988_v2, %v1987_v59 }
 0x437   : > { %vm1609_vm13 = vcmp.gt.f32.partialorder %v1567_v39, 0.0  ;;  %v1641_v0 = vmul.f32 0.01, %v1567_v39  ;;  %v1570_v17 = vadd.f32 %v1989_v28, %v3430_v9 }
 0x439   : > { %v1673_v23 = vsel %vm1609_vm13, %v1567_v39, %v1641_v0  ;;  %vm1610_vm14 = vcmp.gt.f32.partialorder %v1570_v17, 0.0  ;;  %v1642_v37 = vmul.f32 0.01, %v1570_v17  ;;  %v1990_v4 = vpop.f32.mrb[60].mxu1 }
 0x43a   : > { %1705 = vst [vmem:[%s3435_s28 + $0xe0] sm:$0xff] %v1673_v23  ;;  %v1991_v30 = vpop.f32.mrb[61].mxu1 }
 0x43b   : > { %v1674_v46 = vsel %vm1610_vm14, %v1570_v17, %v1642_v37  ;;  %v1992_v35 = vadd.f32 %v1991_v30, %v1990_v4  ;;  %v1993_v7 = vpop.f32.mrb[62].mxu1 }
 0x43c   : > { %1706 = vst [vmem:[%s3435_s28 + $0xe8] sm:$0xff] %v1674_v46  ;;  %v1994_v52 = vpop.f32.mrb[63].mxu1 }
 0x43d   : > { %v1575_v8 = vadd.f32 %v1992_v35, %v3430_v9  ;;  %v1995_v10 = vadd.f32 %v1994_v52, %v1993_v7 }
 0x43f   : > { %vm1611_vm15 = vcmp.gt.f32.partialorder %v1575_v8, 0.0  ;;  %v1643_v1 = vmul.f32 0.01, %v1575_v8  ;;  %v1578_v56 = vadd.f32 %v1995_v10, %v3430_v9 }
 0x441   : > { %v1675_v60 = vsel %vm1611_vm15, %v1575_v8, %v1643_v1  ;;  %vm1612_vm0 = vcmp.gt.f32.partialorder %v1578_v56, 0.0  ;;  %v1644_v15 = vmul.f32 0.01, %v1578_v56 }
 0x442   : > { %1707 = vst [vmem:[%s3435_s28 + $0xf0] sm:$0xff] %v1675_v60 }
 0x443   : > { %v1676_v51 = vsel %vm1612_vm0, %v1578_v56, %v1644_v15 }
 0x444   : > { %1708 = vst [vmem:[%s3435_s28 + $0xf8] sm:$0xff] %v1676_v51 }
 0x445   : > { %2417 = shalt.err (!%p2414_p2)
}
 0x446   : > { %s2418_s24 = scalar_lea.hbm %s3502_s23, 4096  ;;  %s2422_s13 = scalar_lea.hbm %s3555_s5, 8192 }
 0x447   : > { %p2419_p13 = scmp.ne.s32.totalorder %s3502_s23, %s2418_s24  ;;  %p2423_p4 = scmp.lt.u32.totalorder %s3502_s23, %s3555_s5 }
 0x448   : > { %p2424_p7 = scmp.lt.u32.totalorder %s2422_s13, %s2418_s24  ;;  %p2426_p11 = scmp.lt.u32.totalorder %s2418_s24, %s3502_s23 }
 0x449   : > { %p2420_p6 = pnand %p2419_p13, %p3659_p0 }
 0x44a   : > { %p2425_p8 = por %p2424_p7, %p2423_p4 }
 0x44b   : > { %p2421_p10 = pneg %p2420_p6 }
 0x44c   : > { %p2427_p1 = por %p2426_p11, %p2425_p8 }
 0x44e   : > { %p2428_p3 = pnand %p2427_p1, %p2421_p10 }
 0x450   : > { %2431 = shalt.err (!%p2428_p3)
}
 0x451   : > { %s2485_s14 = smov 128   ;;  %s2486_s30 = smov 8  }
 0x452   : > { %2006 = dma.vmem_to_hbm [thread:$0]  (%p3659_p0), %s3504_s15, 4096, %s3502_s23, %s1710_s22, %s2485_s14, %s2485_s14, %s2486_s30  }
 0x453 PF: > { %s1738_s11 = sand.u32 1, %s2462_s18   ;;  %p3660_p5 = scmp.ne.s32.totalorder %s3590_s25, 0 }
 0x454   : > { %p3661_p9 = scmp.ge.s32.totalorder %s2474_s21, 2  ;;  %s1739_s7 = scalar_lea.sflag [#allocation4], %s1738_s11 }
 0x456   : > { %p2020_p12 = pnand %p3661_p9, %p3660_p5 }
 0x458   : > { %2457 = dma.done.wait (!%p2020_p12), %s1739_s7, 4096  }
 0x459   : > { %2459 = vsyncadd (!%p2020_p12), %s1739_s7, 4294963200  ;;  %p19_p2 = scmp.ge.s32.totalorder %s2630_s16, 4   ;;  %s3662_s18 = smov %s2466_s19 }
 0x45a   : > { %s3663_s19 = smov %s2470_s20  ;;  %s3664_s20 = smov %s2639_s27 }
 0x45b   : > { %s3665_s21 = smov %s2630_s16  ;;  %21 = sbr.rel (!%p19_p2) target bundleno = 6 (0x6), region = 93 }
 0x462   :  { %1744 = vsyncpa [#allocation3], 1 }
 0x463   :  { %1746 = vsyncpa [#allocation3 + $0x1], 1 }
 0x464   :  { %1747 = vsyncpa [#allocation6], 1 }
 0x465   :  { %1748 = vsyncpa [#allocation4], 1 }
 0x466   :  { %1750 = vsyncpa [#allocation4 + $0x1], 1 }

</bundles_post_ra>
